<compile_context>
chip_gen: v7x
topology: tpu7x:2x2x1
jax: 0.10.0
libtpu: 0.0.40
codegen_flags: <defaults>
</compile_context>

<pallas_src>
import math

import jax
import jax.numpy as jnp
from jax.experimental import pallas as pl
from jax.experimental.pallas import tpu as pltpu

D_MODEL = 32          # input_size (must be divisible by NUM_HEADS)
NUM_HEADS = 4
HEAD_DIM = D_MODEL // NUM_HEADS
FFN_HIDDEN = 256      # hidden_size (dim_feedforward)
NUM_LAYERS = 2
OUTPUT_SIZE = 7       # 3 position deltas + 4 orientation deltas
LN_EPS = 1e-5
OUT_PAD = 128         # lane-dense padded output width

# ------------------- packed slab layout (static, 128-lane aligned) ----------
# Slab "w32" (32, 1152): per layer stride 512 columns:
#   [c+0   : c+96 ]  in_proj weight (Q cols pre-scaled)   (zero pad to 128)
#   [c+128 : c+160]  out_proj weight                       (zero pad to 256)
#   [c+256 : c+512]  linear1 weight
# then fc1 weight at [1024 : 1152].
W32_PER_LAYER = 512
OUT_W_OFS = 128
L1_W_OFS = 256
HEAD_W32_OFS = NUM_LAYERS * W32_PER_LAYER              # 1024
W32_COLS = HEAD_W32_OFS + 128                          # 1152

# Slab "wbig" (256, 512): one 128-lane band per matrix:
#   [:,   0: 32]   linear2 weight, layer 0
#   [:, 128:160]   linear2 weight, layer 1
#   [:128, 256:320] fc2 weight
#   [:64,  384:512] fc3 weight, zero padded 7 -> 128 lanes
WBIG_ROWS = 256
WBIG_COLS = 512
L2_BAND = 128
FC2_COL = 256
FC3_COL = 384

# Slab "bias" (24, 256): 8 rows per layer
#   [in_b, out_b, l1_b, l2_b, ln1_w, ln1_b, ln2_w, ln2_b], then fc1_b, fc2_b, fc3_b.
BIAS_LANES = 256
BIAS_ROWS_PER_LAYER = 8
HEAD_BIAS_ROW = NUM_LAYERS * BIAS_ROWS_PER_LAYER       # 16
BIAS_ROWS = 24


def _layer_norm(x, w, b):
    # One-pass statistics: both reductions depend only on x, so the two XLU
    # reductions are independent instead of chained (var = E[x^2] - E[x]^2).
    mean = jnp.mean(x, axis=-1, keepdims=True)
    mean_sq = jnp.mean(x * x, axis=-1, keepdims=True)
    var = mean_sq - mean * mean
    return (x - mean) * jax.lax.rsqrt(var + LN_EPS) * w + b


# --------------------------------- kernel -----------------------------------

def transformer_kernel(x_ref, w32_ref, wbig_ref, bias_ref, o_ref, attn_ref):
    D, H, Dh, F = D_MODEL, NUM_HEADS, HEAD_DIM, FFN_HIDDEN

    x = x_ref[...]                        # (S, D) tokens of the kept batch element

    for layer in range(NUM_LAYERS):       # static Python loop (unrolled)
        c = layer * W32_PER_LAYER
        r = layer * BIAS_ROWS_PER_LAYER

        # Slab slices are taken from the Refs at each use site (no full-slab
        # materialisation); all weight lane offsets are multiples of 128.
        in_b = bias_ref[r + 0:r + 1, :3 * D]
        out_b = bias_ref[r + 1:r + 2, :D]
        l1_b = bias_ref[r + 2:r + 3, :F]
        l2_b = bias_ref[r + 3:r + 4, :D]
        ln1_w = bias_ref[r + 4:r + 5, :D]
        ln1_b = bias_ref[r + 5:r + 6, :D]
        ln2_w = bias_ref[r + 6:r + 7, :D]
        ln2_b = bias_ref[r + 7:r + 8, :D]

        # ---- multi-head self-attention (dropout = identity in eval) ----
        qkv = jnp.dot(x, w32_ref[:, c:c + 3 * D],
                      preferred_element_type=jnp.float32) + in_b          # (S, 96)
        for h in range(H):                 # static loop; heads go to VMEM scratch
            qh = qkv[:, h * Dh:(h + 1) * Dh]                              # (S, 8)
            kh = qkv[:, D + h * Dh:D + (h + 1) * Dh]                      # (S, 8)
            vh = qkv[:, 2 * D + h * Dh:2 * D + (h + 1) * Dh]              # (S, 8)
            s = jnp.einsum('sd,td->st', qh, kh,
                           preferred_element_type=jnp.float32)            # (S, S)
            # explicit softmax: unnormalised p @ v, then one EUP reciprocal on
            # the (S, 1) row sums instead of normalising the (S, S) scores.
            m = jnp.max(s, axis=-1, keepdims=True)
            e = jnp.exp(s - m)
            denom = jnp.sum(e, axis=-1, keepdims=True)
            oh = jnp.dot(e, vh, preferred_element_type=jnp.float32)       # (S, 8)
            attn_ref[:, h * Dh:(h + 1) * Dh] = oh * pl.reciprocal(denom, approx=True)
        attn = jnp.dot(attn_ref[...],
                       w32_ref[:, c + OUT_W_OFS:c + OUT_W_OFS + D],
                       preferred_element_type=jnp.float32) + out_b        # (S, D)

        x = _layer_norm(x + attn, ln1_w, ln1_b)                           # post-LN

        # ---- position-wise feed forward ----
        hdn = jnp.maximum(
            jnp.dot(x, w32_ref[:, c + L1_W_OFS:c + L1_W_OFS + F],
                    preferred_element_type=jnp.float32) + l1_b, 0.0)      # (S, 256)
        ff = jnp.dot(hdn, wbig_ref[:, layer * L2_BAND:layer * L2_BAND + D],
                     preferred_element_type=jnp.float32) + l2_b           # (S, D)
        x = _layer_norm(x + ff, ln2_w, ln2_b)

    # ---- regression head (ReLU-MLP, dropout = identity in eval) ----
    fc1_b = bias_ref[HEAD_BIAS_ROW + 0:HEAD_BIAS_ROW + 1, :128]
    fc2_b = bias_ref[HEAD_BIAS_ROW + 1:HEAD_BIAS_ROW + 2, :64]
    fc3_b = bias_ref[HEAD_BIAS_ROW + 2:HEAD_BIAS_ROW + 3, :OUT_PAD]

    g1 = jnp.maximum(
        jnp.dot(x, w32_ref[:, HEAD_W32_OFS:HEAD_W32_OFS + 128],
                preferred_element_type=jnp.float32) + fc1_b, 0.0)         # (S, 128)
    g2 = jnp.maximum(
        jnp.dot(g1, wbig_ref[:128, FC2_COL:FC2_COL + 64],
                preferred_element_type=jnp.float32) + fc2_b, 0.0)         # (S, 64)
    out = jnp.dot(g2, wbig_ref[:64, FC3_COL:FC3_COL + OUT_PAD],
                  preferred_element_type=jnp.float32) + fc3_b             # (S, 128)
    o_ref[...] = out.astype(o_ref.dtype)


# ----------------------------- parameter setup -----------------------------

def _linear(key, fan_in, w_shape, b_shape):
    k1, k2 = jax.random.split(key)
    bound = 1.0 / math.sqrt(fan_in)
    w = jax.random.uniform(k1, w_shape, jnp.float32, -bound, bound)
    b = jax.random.uniform(k2, b_shape, jnp.float32, -bound, bound)
    return w, b


def init_params(key):
    """Synthetic parameters in 'natural' layout: weights (in, out), biases (out,)."""
    params = []
    keys = jax.random.split(key, NUM_LAYERS * 4 + 3)
    ki = 0
    for _ in range(NUM_LAYERS):
        in_w, in_b = _linear(keys[ki], D_MODEL, (D_MODEL, 3 * D_MODEL), (3 * D_MODEL,)); ki += 1
        out_w, out_b = _linear(keys[ki], D_MODEL, (D_MODEL, D_MODEL), (D_MODEL,)); ki += 1
        l1_w, l1_b = _linear(keys[ki], D_MODEL, (D_MODEL, FFN_HIDDEN), (FFN_HIDDEN,)); ki += 1
        l2_w, l2_b = _linear(keys[ki], FFN_HIDDEN, (FFN_HIDDEN, D_MODEL), (D_MODEL,)); ki += 1
        ln1_w = jnp.ones((D_MODEL,), jnp.float32); ln1_b = jnp.zeros((D_MODEL,), jnp.float32)
        ln2_w = jnp.ones((D_MODEL,), jnp.float32); ln2_b = jnp.zeros((D_MODEL,), jnp.float32)
        params += [in_w, in_b, out_w, out_b, l1_w, l1_b, l2_w, l2_b,
                   ln1_w, ln1_b, ln2_w, ln2_b]
    fc1_w, fc1_b = _linear(keys[ki], D_MODEL, (D_MODEL, 128), (128,)); ki += 1
    fc2_w, fc2_b = _linear(keys[ki], 128, (128, 64), (64,)); ki += 1
    fc3_w, fc3_b = _linear(keys[ki], 64, (64, OUTPUT_SIZE), (OUTPUT_SIZE,)); ki += 1
    params += [fc1_w, fc1_b, fc2_w, fc2_b, fc3_w, fc3_b]
    return params


def pack_params(params):
    """Pack the 30 parameter tensors into 3 lane-dense, 128-lane-aligned slabs.

    Also folds the 1/sqrt(head_dim) attention scale into the Q projection.
    """
    scale = 1.0 / math.sqrt(HEAD_DIM)

    def bias_row(v):
        v = v.reshape(-1).astype(jnp.float32)
        return jnp.pad(v, (0, BIAS_LANES - v.shape[0]))

    w32 = jnp.zeros((D_MODEL, W32_COLS), jnp.float32)
    wbig = jnp.zeros((WBIG_ROWS, WBIG_COLS), jnp.float32)
    bias_rows = []

    for layer in range(NUM_LAYERS):
        (in_w, in_b, out_w, out_b, l1_w, l1_b, l2_w, l2_b,
         ln1_w, ln1_b, ln2_w, ln2_b) = params[layer * 12:(layer + 1) * 12]
        in_w = in_w.at[:, :D_MODEL].multiply(scale)      # fold scale into Q
        in_b = in_b.at[:D_MODEL].multiply(scale)
        c = layer * W32_PER_LAYER
        w32 = w32.at[:, c:c + 3 * D_MODEL].set(in_w)
        w32 = w32.at[:, c + OUT_W_OFS:c + OUT_W_OFS + D_MODEL].set(out_w)
        w32 = w32.at[:, c + L1_W_OFS:c + L1_W_OFS + FFN_HIDDEN].set(l1_w)
        wbig = wbig.at[:, layer * L2_BAND:layer * L2_BAND + D_MODEL].set(l2_w)
        bias_rows += [bias_row(in_b), bias_row(out_b), bias_row(l1_b), bias_row(l2_b),
                      bias_row(ln1_w), bias_row(ln1_b), bias_row(ln2_w), bias_row(ln2_b)]

    fc1_w, fc1_b, fc2_w, fc2_b, fc3_w, fc3_b = params[NUM_LAYERS * 12:]
    w32 = w32.at[:, HEAD_W32_OFS:HEAD_W32_OFS + 128].set(fc1_w)
    wbig = wbig.at[:128, FC2_COL:FC2_COL + 64].set(fc2_w)
    wbig = wbig.at[:64, FC3_COL:FC3_COL + OUTPUT_SIZE].set(fc3_w)   # lane-padded fc3
    bias_rows += [bias_row(fc1_b), bias_row(fc2_b), bias_row(fc3_b)]

    biases = jnp.stack(bias_rows, axis=0)                 # (19, 256)
    biases = jnp.pad(biases, ((0, BIAS_ROWS - biases.shape[0]), (0, 0)))
    return w32, wbig, biases


# -------------------------------- wrapper ----------------------------------

@jax.jit
def transformer_forward(x, packed):
    """x: (S, B, D) with batch_first=False semantics; returns (S, OUTPUT_SIZE)."""
    w32, wbig, biases = packed
    S = x.shape[0]
    # Grid-less, all-VMEM design: intermediates grow with S ((S,S) scores per
    # head, (S,256) FFN).  Fine for short sequences on v5e/v6e/v7x; long-S
    # reuse should switch to an S-tiled grid + flash-style attention (v7x has
    # only 64 MiB physical VMEM).  A call carrying several sequences would add
    # a leading "parallel" grid axis to use v7x's second TensorCore.
    assert S <= 1024, "grid-less kernel is sized for short sequences only"
    # The encoder never mixes batch elements and the head only reads
    # encoder_out[:, -1, :], so running the whole network on x[:, -1, :] is exact.
    x_last = x[:, -1, :]                                    # (S, D)
    out = pl.pallas_call(
        transformer_kernel,
        out_shape=jax.ShapeDtypeStruct((S, OUT_PAD), jnp.float32),
        in_specs=[pl.BlockSpec(memory_space=pltpu.MemorySpace.VMEM)] * 4,
        out_specs=pl.BlockSpec(memory_space=pltpu.MemorySpace.VMEM),
        scratch_shapes=[pltpu.VMEM((S, D_MODEL), jnp.float32)],   # per-head outputs
    )(x_last, w32, wbig, biases)
    return out[:, :OUTPUT_SIZE]


# --------------------------- pure-JAX reference -----------------------------

def _layer_norm_ref(x, w, b):
    mu = jnp.mean(x, axis=-1, keepdims=True)
    var = jnp.mean((x - mu) ** 2, axis=-1, keepdims=True)
    return (x - mu) * jax.lax.rsqrt(var + LN_EPS) * w + b


def reference_forward(x, params):
    """Full-batch reference in the original (unpacked) parameter layout."""
    S, B, D = x.shape
    H, Dh = NUM_HEADS, HEAD_DIM
    scale = 1.0 / math.sqrt(Dh)
    h = x.reshape(S * B, D)
    for layer in range(NUM_LAYERS):
        (in_w, in_b, out_w, out_b, l1_w, l1_b, l2_w, l2_b,
         ln1_w, ln1_b, ln2_w, ln2_b) = params[layer * 12:(layer + 1) * 12]
        qkv = h @ in_w + in_b
        q = qkv[:, :D].reshape(S, B * H, Dh).transpose(1, 0, 2)
        k = qkv[:, D:2 * D].reshape(S, B * H, Dh).transpose(1, 0, 2)
        v = qkv[:, 2 * D:].reshape(S, B * H, Dh).transpose(1, 0, 2)
        s = jnp.einsum('nqd,nkd->nqk', q, k) * scale
        p = jax.nn.softmax(s, axis=-1)
        a = jnp.einsum('nqk,nkd->nqd', p, v).transpose(1, 0, 2).reshape(S * B, D)
        a = a @ out_w + out_b
        h = _layer_norm_ref(h + a, ln1_w, ln1_b)
        ff = jnp.maximum(h @ l1_w + l1_b, 0.0) @ l2_w + l2_b
        h = _layer_norm_ref(h + ff, ln2_w, ln2_b)
    fc1_w, fc1_b, fc2_w, fc2_b, fc3_w, fc3_b = params[NUM_LAYERS * 12:]
    xl = h.reshape(S, B, D)[:, -1, :]
    h1 = jnp.maximum(xl @ fc1_w + fc1_b, 0.0)
    h2 = jnp.maximum(h1 @ fc2_w + fc2_b, 0.0)
    return h2 @ fc3_w + fc3_b


if __name__ == "__main__":
    key = jax.random.PRNGKey(0)
    k_x, k_p = jax.random.split(key)
    S, B = 8, 2
    x = jax.random.normal(k_x, (S, B, D_MODEL), jnp.float32)
    params = init_params(k_p)
    packed = pack_params(params)

    out = transformer_forward(x, packed)
    out = jax.block_until_ready(out)

    ref = reference_forward(x, params)
    assert out.shape == (S, OUTPUT_SIZE)
    assert bool(jnp.all(jnp.isfinite(out)))
    # Slightly above 2e-3 to cover the approximate EUP reciprocal and the
    # one-pass LayerNorm variance.
    assert bool(jnp.allclose(out, ref, rtol=3e-3, atol=3e-3))

    print("KERNEL_OK")
</pallas_src>

<mosaic_0001>
module attributes {stable_mosaic.version = 11 : i64} {
  func.func @transformer_kernel(%arg0: memref<8x32xf32, #tpu.memory_space<vmem>>, %arg1: memref<32x1152xf32, #tpu.memory_space<vmem>>, %arg2: memref<256x512xf32, #tpu.memory_space<vmem>>, %arg3: memref<24x256xf32, #tpu.memory_space<vmem>>, %arg4: memref<8x128xf32, #tpu.memory_space<vmem>>, %arg5: memref<8x32xf32, #tpu.memory_space<vmem>>) attributes {dimension_semantics = [], scalar_prefetch = 0 : i64, scratch_operands = 1 : i64, tpu.core_type = #tpu.core_type<tc>} {
    %c0 = arith.constant 0 : index
    %c0_0 = arith.constant 0 : index
    %0 = vector.load %arg0[%c0, %c0_0] : memref<8x32xf32, #tpu.memory_space<vmem>>, vector<8x32xf32>
    %c0_1 = arith.constant 0 : index
    %c0_2 = arith.constant 0 : index
    %1 = vector.load %arg3[%c0_1, %c0_2] : memref<24x256xf32, #tpu.memory_space<vmem>>, vector<1x96xf32>
    %c1 = arith.constant 1 : index
    %c0_3 = arith.constant 0 : index
    %2 = vector.load %arg3[%c1, %c0_3] : memref<24x256xf32, #tpu.memory_space<vmem>>, vector<1x32xf32>
    %c2 = arith.constant 2 : index
    %c0_4 = arith.constant 0 : index
    %3 = vector.load %arg3[%c2, %c0_4] : memref<24x256xf32, #tpu.memory_space<vmem>>, vector<1x256xf32>
    %c3 = arith.constant 3 : index
    %c0_5 = arith.constant 0 : index
    %4 = vector.load %arg3[%c3, %c0_5] : memref<24x256xf32, #tpu.memory_space<vmem>>, vector<1x32xf32>
    %c4 = arith.constant 4 : index
    %c0_6 = arith.constant 0 : index
    %5 = vector.load %arg3[%c4, %c0_6] : memref<24x256xf32, #tpu.memory_space<vmem>>, vector<1x32xf32>
    %c5 = arith.constant 5 : index
    %c0_7 = arith.constant 0 : index
    %6 = vector.load %arg3[%c5, %c0_7] : memref<24x256xf32, #tpu.memory_space<vmem>>, vector<1x32xf32>
    %c6 = arith.constant 6 : index
    %c0_8 = arith.constant 0 : index
    %7 = vector.load %arg3[%c6, %c0_8] : memref<24x256xf32, #tpu.memory_space<vmem>>, vector<1x32xf32>
    %c7 = arith.constant 7 : index
    %c0_9 = arith.constant 0 : index
    %8 = vector.load %arg3[%c7, %c0_9] : memref<24x256xf32, #tpu.memory_space<vmem>>, vector<1x32xf32>
    %c0_10 = arith.constant 0 : index
    %c0_11 = arith.constant 0 : index
    %9 = vector.load %arg1[%c0_10, %c0_11] : memref<32x1152xf32, #tpu.memory_space<vmem>>, vector<32x96xf32>
    %cst = arith.constant dense<0.000000e+00> : vector<8x96xf32>
    %10 = tpu.matmul %0, %9, %cst {dimension_numbers = #tpu.dot_dimension_numbers<[1], [0], [0], [1], [0, 0, 1, 1], [], []>} : vector<8x32xf32>, vector<32x96xf32>, vector<8x96xf32> -> vector<8x96xf32>
    %11 = vector.broadcast %1 : vector<1x96xf32> to vector<8x96xf32>
    %12 = arith.addf %10, %11 : vector<8x96xf32>
    %13 = vector.extract_strided_slice %12 {offsets = [0, 0], sizes = [8, 8], strides = [1, 1]} : vector<8x96xf32> to vector<8x8xf32>
    %14 = vector.extract_strided_slice %12 {offsets = [0, 32], sizes = [8, 8], strides = [1, 1]} : vector<8x96xf32> to vector<8x8xf32>
    %15 = vector.extract_strided_slice %12 {offsets = [0, 64], sizes = [8, 8], strides = [1, 1]} : vector<8x96xf32> to vector<8x8xf32>
    "tpu.trace_start"() <{level = 10 : i32, message = "sd,td->st"}> : () -> ()
    %cst_12 = arith.constant dense<0.000000e+00> : vector<8x8xf32>
    %16 = tpu.matmul %13, %14, %cst_12 {dimension_numbers = #tpu.dot_dimension_numbers<[1], [1], [0], [0], [0, 0, 1, 0], [], []>} : vector<8x8xf32>, vector<8x8xf32>, vector<8x8xf32> -> vector<8x8xf32>
    "tpu.trace_stop"() : () -> ()
    %cst_13 = arith.constant dense<0xFF800000> : vector<8xf32>
    %17 = vector.multi_reduction <maximumf>, %16, %cst_13 [1] : vector<8x8xf32> to vector<8xf32>
    %18 = vector.shape_cast %17 : vector<8xf32> to vector<8x1xf32>
    %19 = vector.broadcast %18 : vector<8x1xf32> to vector<8x8xf32>
    %20 = arith.subf %16, %19 : vector<8x8xf32>
    %21 = math.exp %20 : vector<8x8xf32>
    %cst_14 = arith.constant dense<0.000000e+00> : vector<8xf32>
    %22 = vector.multi_reduction <add>, %21, %cst_14 [1] : vector<8x8xf32> to vector<8xf32>
    %23 = vector.shape_cast %22 : vector<8xf32> to vector<8x1xf32>
    %cst_15 = arith.constant dense<0.000000e+00> : vector<8x8xf32>
    %24 = tpu.matmul %21, %15, %cst_15 {dimension_numbers = #tpu.dot_dimension_numbers<[1], [0], [0], [1], [0, 0, 1, 1], [], []>} : vector<8x8xf32>, vector<8x8xf32>, vector<8x8xf32> -> vector<8x8xf32>
    %25 = tpu.reciprocal %23 {approx = true} : vector<8x1xf32> -> vector<8x1xf32>
    %26 = vector.broadcast %25 : vector<8x1xf32> to vector<8x8xf32>
    %27 = arith.mulf %24, %26 : vector<8x8xf32>
    %c0_16 = arith.constant 0 : index
    %c0_17 = arith.constant 0 : index
    %28 = vector.load %arg5[%c0_16, %c0_17] : memref<8x32xf32, #tpu.memory_space<vmem>>, vector<8x8xf32>
    tpu.vector_store %arg5[%c0_16, %c0_17], %27 {strides = array<i32>} : memref<8x32xf32, #tpu.memory_space<vmem>>, vector<8x8xf32>,
    %29 = vector.extract_strided_slice %12 {offsets = [0, 8], sizes = [8, 8], strides = [1, 1]} : vector<8x96xf32> to vector<8x8xf32>
    %30 = vector.extract_strided_slice %12 {offsets = [0, 40], sizes = [8, 8], strides = [1, 1]} : vector<8x96xf32> to vector<8x8xf32>
    %31 = vector.extract_strided_slice %12 {offsets = [0, 72], sizes = [8, 8], strides = [1, 1]} : vector<8x96xf32> to vector<8x8xf32>
    "tpu.trace_start"() <{level = 10 : i32, message = "sd,td->st"}> : () -> ()
    %cst_18 = arith.constant dense<0.000000e+00> : vector<8x8xf32>
    %32 = tpu.matmul %29, %30, %cst_18 {dimension_numbers = #tpu.dot_dimension_numbers<[1], [1], [0], [0], [0, 0, 1, 0], [], []>} : vector<8x8xf32>, vector<8x8xf32>, vector<8x8xf32> -> vector<8x8xf32>
    "tpu.trace_stop"() : () -> ()
    %cst_19 = arith.constant dense<0xFF800000> : vector<8xf32>
    %33 = vector.multi_reduction <maximumf>, %32, %cst_19 [1] : vector<8x8xf32> to vector<8xf32>
    %34 = vector.shape_cast %33 : vector<8xf32> to vector<8x1xf32>
    %35 = vector.broadcast %34 : vector<8x1xf32> to vector<8x8xf32>
    %36 = arith.subf %32, %35 : vector<8x8xf32>
    %37 = math.exp %36 : vector<8x8xf32>
    %cst_20 = arith.constant dense<0.000000e+00> : vector<8xf32>
    %38 = vector.multi_reduction <add>, %37, %cst_20 [1] : vector<8x8xf32> to vector<8xf32>
    %39 = vector.shape_cast %38 : vector<8xf32> to vector<8x1xf32>
    %cst_21 = arith.constant dense<0.000000e+00> : vector<8x8xf32>
    %40 = tpu.matmul %37, %31, %cst_21 {dimension_numbers = #tpu.dot_dimension_numbers<[1], [0], [0], [1], [0, 0, 1, 1], [], []>} : vector<8x8xf32>, vector<8x8xf32>, vector<8x8xf32> -> vector<8x8xf32>
    %41 = tpu.reciprocal %39 {approx = true} : vector<8x1xf32> -> vector<8x1xf32>
    %42 = vector.broadcast %41 : vector<8x1xf32> to vector<8x8xf32>
    %43 = arith.mulf %40, %42 : vector<8x8xf32>
    %c0_22 = arith.constant 0 : index
    %c8 = arith.constant 8 : index
    %44 = vector.load %arg5[%c0_22, %c8] : memref<8x32xf32, #tpu.memory_space<vmem>>, vector<8x8xf32>
    tpu.vector_store %arg5[%c0_22, %c8], %43 {strides = array<i32>} : memref<8x32xf32, #tpu.memory_space<vmem>>, vector<8x8xf32>,
    %45 = vector.extract_strided_slice %12 {offsets = [0, 16], sizes = [8, 8], strides = [1, 1]} : vector<8x96xf32> to vector<8x8xf32>
    %46 = vector.extract_strided_slice %12 {offsets = [0, 48], sizes = [8, 8], strides = [1, 1]} : vector<8x96xf32> to vector<8x8xf32>
    %47 = vector.extract_strided_slice %12 {offsets = [0, 80], sizes = [8, 8], strides = [1, 1]} : vector<8x96xf32> to vector<8x8xf32>
    "tpu.trace_start"() <{level = 10 : i32, message = "sd,td->st"}> : () -> ()
    %cst_23 = arith.constant dense<0.000000e+00> : vector<8x8xf32>
    %48 = tpu.matmul %45, %46, %cst_23 {dimension_numbers = #tpu.dot_dimension_numbers<[1], [1], [0], [0], [0, 0, 1, 0], [], []>} : vector<8x8xf32>, vector<8x8xf32>, vector<8x8xf32> -> vector<8x8xf32>
    "tpu.trace_stop"() : () -> ()
    %cst_24 = arith.constant dense<0xFF800000> : vector<8xf32>
    %49 = vector.multi_reduction <maximumf>, %48, %cst_24 [1] : vector<8x8xf32> to vector<8xf32>
    %50 = vector.shape_cast %49 : vector<8xf32> to vector<8x1xf32>
    %51 = vector.broadcast %50 : vector<8x1xf32> to vector<8x8xf32>
    %52 = arith.subf %48, %51 : vector<8x8xf32>
    %53 = math.exp %52 : vector<8x8xf32>
    %cst_25 = arith.constant dense<0.000000e+00> : vector<8xf32>
    %54 = vector.multi_reduction <add>, %53, %cst_25 [1] : vector<8x8xf32> to vector<8xf32>
    %55 = vector.shape_cast %54 : vector<8xf32> to vector<8x1xf32>
    %cst_26 = arith.constant dense<0.000000e+00> : vector<8x8xf32>
    %56 = tpu.matmul %53, %47, %cst_26 {dimension_numbers = #tpu.dot_dimension_numbers<[1], [0], [0], [1], [0, 0, 1, 1], [], []>} : vector<8x8xf32>, vector<8x8xf32>, vector<8x8xf32> -> vector<8x8xf32>
    %57 = tpu.reciprocal %55 {approx = true} : vector<8x1xf32> -> vector<8x1xf32>
    %58 = vector.broadcast %57 : vector<8x1xf32> to vector<8x8xf32>
    %59 = arith.mulf %56, %58 : vector<8x8xf32>
    %c0_27 = arith.constant 0 : index
    %c16 = arith.constant 16 : index
    %60 = vector.load %arg5[%c0_27, %c16] : memref<8x32xf32, #tpu.memory_space<vmem>>, vector<8x8xf32>
    tpu.vector_store %arg5[%c0_27, %c16], %59 {strides = array<i32>} : memref<8x32xf32, #tpu.memory_space<vmem>>, vector<8x8xf32>,
    %61 = vector.extract_strided_slice %12 {offsets = [0, 24], sizes = [8, 8], strides = [1, 1]} : vector<8x96xf32> to vector<8x8xf32>
    %62 = vector.extract_strided_slice %12 {offsets = [0, 56], sizes = [8, 8], strides = [1, 1]} : vector<8x96xf32> to vector<8x8xf32>
    %63 = vector.extract_strided_slice %12 {offsets = [0, 88], sizes = [8, 8], strides = [1, 1]} : vector<8x96xf32> to vector<8x8xf32>
    "tpu.trace_start"() <{level = 10 : i32, message = "sd,td->st"}> : () -> ()
    %cst_28 = arith.constant dense<0.000000e+00> : vector<8x8xf32>
    %64 = tpu.matmul %61, %62, %cst_28 {dimension_numbers = #tpu.dot_dimension_numbers<[1], [1], [0], [0], [0, 0, 1, 0], [], []>} : vector<8x8xf32>, vector<8x8xf32>, vector<8x8xf32> -> vector<8x8xf32>
    "tpu.trace_stop"() : () -> ()
    %cst_29 = arith.constant dense<0xFF800000> : vector<8xf32>
    %65 = vector.multi_reduction <maximumf>, %64, %cst_29 [1] : vector<8x8xf32> to vector<8xf32>
    %66 = vector.shape_cast %65 : vector<8xf32> to vector<8x1xf32>
    %67 = vector.broadcast %66 : vector<8x1xf32> to vector<8x8xf32>
    %68 = arith.subf %64, %67 : vector<8x8xf32>
    %69 = math.exp %68 : vector<8x8xf32>
    %cst_30 = arith.constant dense<0.000000e+00> : vector<8xf32>
    %70 = vector.multi_reduction <add>, %69, %cst_30 [1] : vector<8x8xf32> to vector<8xf32>
    %71 = vector.shape_cast %70 : vector<8xf32> to vector<8x1xf32>
    %cst_31 = arith.constant dense<0.000000e+00> : vector<8x8xf32>
    %72 = tpu.matmul %69, %63, %cst_31 {dimension_numbers = #tpu.dot_dimension_numbers<[1], [0], [0], [1], [0, 0, 1, 1], [], []>} : vector<8x8xf32>, vector<8x8xf32>, vector<8x8xf32> -> vector<8x8xf32>
    %73 = tpu.reciprocal %71 {approx = true} : vector<8x1xf32> -> vector<8x1xf32>
    %74 = vector.broadcast %73 : vector<8x1xf32> to vector<8x8xf32>
    %75 = arith.mulf %72, %74 : vector<8x8xf32>
    %c0_32 = arith.constant 0 : index
    %c24 = arith.constant 24 : index
    %76 = vector.load %arg5[%c0_32, %c24] : memref<8x32xf32, #tpu.memory_space<vmem>>, vector<8x8xf32>
    tpu.vector_store %arg5[%c0_32, %c24], %75 {strides = array<i32>} : memref<8x32xf32, #tpu.memory_space<vmem>>, vector<8x8xf32>,
    %c0_33 = arith.constant 0 : index
    %c0_34 = arith.constant 0 : index
    %77 = vector.load %arg5[%c0_33, %c0_34] : memref<8x32xf32, #tpu.memory_space<vmem>>, vector<8x32xf32>
    %c0_35 = arith.constant 0 : index
    %c128 = arith.constant 128 : index
    %78 = vector.load %arg1[%c0_35, %c128] : memref<32x1152xf32, #tpu.memory_space<vmem>>, vector<32x32xf32>
    %cst_36 = arith.constant dense<0.000000e+00> : vector<8x32xf32>
    %79 = tpu.matmul %77, %78, %cst_36 {dimension_numbers = #tpu.dot_dimension_numbers<[1], [0], [0], [1], [0, 0, 1, 1], [], []>} : vector<8x32xf32>, vector<32x32xf32>, vector<8x32xf32> -> vector<8x32xf32>
    %80 = vector.broadcast %2 : vector<1x32xf32> to vector<8x32xf32>
    %81 = arith.addf %79, %80 : vector<8x32xf32>
    %82 = arith.addf %0, %81 : vector<8x32xf32>
    %cst_37 = arith.constant dense<0.000000e+00> : vector<8xf32>
    %83 = vector.multi_reduction <add>, %82, %cst_37 [1] : vector<8x32xf32> to vector<8xf32>
    %84 = vector.shape_cast %83 : vector<8xf32> to vector<8x1xf32>
    %cst_38 = arith.constant 3.200000e+01 : f32
    %85 = vector.broadcast %cst_38 : f32 to vector<8x1xf32>
    %86 = arith.divf %84, %85 : vector<8x1xf32>
    %87 = arith.mulf %82, %82 : vector<8x32xf32>
    %cst_39 = arith.constant dense<0.000000e+00> : vector<8xf32>
    %88 = vector.multi_reduction <add>, %87, %cst_39 [1] : vector<8x32xf32> to vector<8xf32>
    %89 = vector.shape_cast %88 : vector<8xf32> to vector<8x1xf32>
    %cst_40 = arith.constant 3.200000e+01 : f32
    %90 = vector.broadcast %cst_40 : f32 to vector<8x1xf32>
    %91 = arith.divf %89, %90 : vector<8x1xf32>
    %92 = arith.mulf %86, %86 : vector<8x1xf32>
    %93 = arith.subf %91, %92 : vector<8x1xf32>
    %94 = vector.broadcast %86 : vector<8x1xf32> to vector<8x32xf32>
    %95 = arith.subf %82, %94 : vector<8x32xf32>
    %cst_41 = arith.constant 9.99999974E-6 : f32
    %96 = vector.broadcast %cst_41 : f32 to vector<8x1xf32>
    %97 = arith.addf %93, %96 : vector<8x1xf32>
    %98 = math.rsqrt %97 : vector<8x1xf32>
    %99 = vector.broadcast %98 : vector<8x1xf32> to vector<8x32xf32>
    %100 = arith.mulf %95, %99 : vector<8x32xf32>
    %101 = vector.broadcast %5 : vector<1x32xf32> to vector<8x32xf32>
    %102 = arith.mulf %100, %101 : vector<8x32xf32>
    %103 = vector.broadcast %6 : vector<1x32xf32> to vector<8x32xf32>
    %104 = arith.addf %102, %103 : vector<8x32xf32>
    %c0_42 = arith.constant 0 : index
    %c256 = arith.constant 256 : index
    %105 = vector.load %arg1[%c0_42, %c256] : memref<32x1152xf32, #tpu.memory_space<vmem>>, vector<32x256xf32>
    %cst_43 = arith.constant dense<0.000000e+00> : vector<8x256xf32>
    %106 = tpu.matmul %104, %105, %cst_43 {dimension_numbers = #tpu.dot_dimension_numbers<[1], [0], [0], [1], [0, 0, 1, 1], [], []>} : vector<8x32xf32>, vector<32x256xf32>, vector<8x256xf32> -> vector<8x256xf32>
    %107 = vector.broadcast %3 : vector<1x256xf32> to vector<8x256xf32>
    %108 = arith.addf %106, %107 : vector<8x256xf32>
    %cst_44 = arith.constant 0.000000e+00 : f32
    %109 = vector.broadcast %cst_44 : f32 to vector<8x256xf32>
    %110 = arith.maximumf %108, %109 : vector<8x256xf32>
    %c0_45 = arith.constant 0 : index
    %c0_46 = arith.constant 0 : index
    %111 = vector.load %arg2[%c0_45, %c0_46] : memref<256x512xf32, #tpu.memory_space<vmem>>, vector<256x32xf32>
    %cst_47 = arith.constant dense<0.000000e+00> : vector<8x32xf32>
    %112 = tpu.matmul %110, %111, %cst_47 {dimension_numbers = #tpu.dot_dimension_numbers<[1], [0], [0], [1], [0, 0, 1, 1], [], []>} : vector<8x256xf32>, vector<256x32xf32>, vector<8x32xf32> -> vector<8x32xf32>
    %113 = vector.broadcast %4 : vector<1x32xf32> to vector<8x32xf32>
    %114 = arith.addf %112, %113 : vector<8x32xf32>
    %115 = arith.addf %104, %114 : vector<8x32xf32>
    %cst_48 = arith.constant dense<0.000000e+00> : vector<8xf32>
    %116 = vector.multi_reduction <add>, %115, %cst_48 [1] : vector<8x32xf32> to vector<8xf32>
    %117 = vector.shape_cast %116 : vector<8xf32> to vector<8x1xf32>
    %cst_49 = arith.constant 3.200000e+01 : f32
    %118 = vector.broadcast %cst_49 : f32 to vector<8x1xf32>
    %119 = arith.divf %117, %118 : vector<8x1xf32>
    %120 = arith.mulf %115, %115 : vector<8x32xf32>
    %cst_50 = arith.constant dense<0.000000e+00> : vector<8xf32>
    %121 = vector.multi_reduction <add>, %120, %cst_50 [1] : vector<8x32xf32> to vector<8xf32>
    %122 = vector.shape_cast %121 : vector<8xf32> to vector<8x1xf32>
    %cst_51 = arith.constant 3.200000e+01 : f32
    %123 = vector.broadcast %cst_51 : f32 to vector<8x1xf32>
    %124 = arith.divf %122, %123 : vector<8x1xf32>
    %125 = arith.mulf %119, %119 : vector<8x1xf32>
    %126 = arith.subf %124, %125 : vector<8x1xf32>
    %127 = vector.broadcast %119 : vector<8x1xf32> to vector<8x32xf32>
    %128 = arith.subf %115, %127 : vector<8x32xf32>
    %cst_52 = arith.constant 9.99999974E-6 : f32
    %129 = vector.broadcast %cst_52 : f32 to vector<8x1xf32>
    %130 = arith.addf %126, %129 : vector<8x1xf32>
    %131 = math.rsqrt %130 : vector<8x1xf32>
    %132 = vector.broadcast %131 : vector<8x1xf32> to vector<8x32xf32>
    %133 = arith.mulf %128, %132 : vector<8x32xf32>
    %134 = vector.broadcast %7 : vector<1x32xf32> to vector<8x32xf32>
    %135 = arith.mulf %133, %134 : vector<8x32xf32>
    %136 = vector.broadcast %8 : vector<1x32xf32> to vector<8x32xf32>
    %137 = arith.addf %135, %136 : vector<8x32xf32>
    %c8_53 = arith.constant 8 : index
    %c0_54 = arith.constant 0 : index
    %138 = vector.load %arg3[%c8_53, %c0_54] : memref<24x256xf32, #tpu.memory_space<vmem>>, vector<1x96xf32>
    %c9 = arith.constant 9 : index
    %c0_55 = arith.constant 0 : index
    %139 = vector.load %arg3[%c9, %c0_55] : memref<24x256xf32, #tpu.memory_space<vmem>>, vector<1x32xf32>
    %c10 = arith.constant 10 : index
    %c0_56 = arith.constant 0 : index
    %140 = vector.load %arg3[%c10, %c0_56] : memref<24x256xf32, #tpu.memory_space<vmem>>, vector<1x256xf32>
    %c11 = arith.constant 11 : index
    %c0_57 = arith.constant 0 : index
    %141 = vector.load %arg3[%c11, %c0_57] : memref<24x256xf32, #tpu.memory_space<vmem>>, vector<1x32xf32>
    %c12 = arith.constant 12 : index
    %c0_58 = arith.constant 0 : index
    %142 = vector.load %arg3[%c12, %c0_58] : memref<24x256xf32, #tpu.memory_space<vmem>>, vector<1x32xf32>
    %c13 = arith.constant 13 : index
    %c0_59 = arith.constant 0 : index
    %143 = vector.load %arg3[%c13, %c0_59] : memref<24x256xf32, #tpu.memory_space<vmem>>, vector<1x32xf32>
    %c14 = arith.constant 14 : index
    %c0_60 = arith.constant 0 : index
    %144 = vector.load %arg3[%c14, %c0_60] : memref<24x256xf32, #tpu.memory_space<vmem>>, vector<1x32xf32>
    %c15 = arith.constant 15 : index
    %c0_61 = arith.constant 0 : index
    %145 = vector.load %arg3[%c15, %c0_61] : memref<24x256xf32, #tpu.memory_space<vmem>>, vector<1x32xf32>
    %c0_62 = arith.constant 0 : index
    %c512 = arith.constant 512 : index
    %146 = vector.load %arg1[%c0_62, %c512] : memref<32x1152xf32, #tpu.memory_space<vmem>>, vector<32x96xf32>
    %cst_63 = arith.constant dense<0.000000e+00> : vector<8x96xf32>
    %147 = tpu.matmul %137, %146, %cst_63 {dimension_numbers = #tpu.dot_dimension_numbers<[1], [0], [0], [1], [0, 0, 1, 1], [], []>} : vector<8x32xf32>, vector<32x96xf32>, vector<8x96xf32> -> vector<8x96xf32>
    %148 = vector.broadcast %138 : vector<1x96xf32> to vector<8x96xf32>
    %149 = arith.addf %147, %148 : vector<8x96xf32>
    %150 = vector.extract_strided_slice %149 {offsets = [0, 0], sizes = [8, 8], strides = [1, 1]} : vector<8x96xf32> to vector<8x8xf32>
    %151 = vector.extract_strided_slice %149 {offsets = [0, 32], sizes = [8, 8], strides = [1, 1]} : vector<8x96xf32> to vector<8x8xf32>
    %152 = vector.extract_strided_slice %149 {offsets = [0, 64], sizes = [8, 8], strides = [1, 1]} : vector<8x96xf32> to vector<8x8xf32>
    "tpu.trace_start"() <{level = 10 : i32, message = "sd,td->st"}> : () -> ()
    %cst_64 = arith.constant dense<0.000000e+00> : vector<8x8xf32>
    %153 = tpu.matmul %150, %151, %cst_64 {dimension_numbers = #tpu.dot_dimension_numbers<[1], [1], [0], [0], [0, 0, 1, 0], [], []>} : vector<8x8xf32>, vector<8x8xf32>, vector<8x8xf32> -> vector<8x8xf32>
    "tpu.trace_stop"() : () -> ()
    %cst_65 = arith.constant dense<0xFF800000> : vector<8xf32>
    %154 = vector.multi_reduction <maximumf>, %153, %cst_65 [1] : vector<8x8xf32> to vector<8xf32>
    %155 = vector.shape_cast %154 : vector<8xf32> to vector<8x1xf32>
    %156 = vector.broadcast %155 : vector<8x1xf32> to vector<8x8xf32>
    %157 = arith.subf %153, %156 : vector<8x8xf32>
    %158 = math.exp %157 : vector<8x8xf32>
    %cst_66 = arith.constant dense<0.000000e+00> : vector<8xf32>
    %159 = vector.multi_reduction <add>, %158, %cst_66 [1] : vector<8x8xf32> to vector<8xf32>
    %160 = vector.shape_cast %159 : vector<8xf32> to vector<8x1xf32>
    %cst_67 = arith.constant dense<0.000000e+00> : vector<8x8xf32>
    %161 = tpu.matmul %158, %152, %cst_67 {dimension_numbers = #tpu.dot_dimension_numbers<[1], [0], [0], [1], [0, 0, 1, 1], [], []>} : vector<8x8xf32>, vector<8x8xf32>, vector<8x8xf32> -> vector<8x8xf32>
    %162 = tpu.reciprocal %160 {approx = true} : vector<8x1xf32> -> vector<8x1xf32>
    %163 = vector.broadcast %162 : vector<8x1xf32> to vector<8x8xf32>
    %164 = arith.mulf %161, %163 : vector<8x8xf32>
    %c0_68 = arith.constant 0 : index
    %c0_69 = arith.constant 0 : index
    %165 = vector.load %arg5[%c0_68, %c0_69] : memref<8x32xf32, #tpu.memory_space<vmem>>, vector<8x8xf32>
    tpu.vector_store %arg5[%c0_68, %c0_69], %164 {strides = array<i32>} : memref<8x32xf32, #tpu.memory_space<vmem>>, vector<8x8xf32>,
    %166 = vector.extract_strided_slice %149 {offsets = [0, 8], sizes = [8, 8], strides = [1, 1]} : vector<8x96xf32> to vector<8x8xf32>
    %167 = vector.extract_strided_slice %149 {offsets = [0, 40], sizes = [8, 8], strides = [1, 1]} : vector<8x96xf32> to vector<8x8xf32>
    %168 = vector.extract_strided_slice %149 {offsets = [0, 72], sizes = [8, 8], strides = [1, 1]} : vector<8x96xf32> to vector<8x8xf32>
    "tpu.trace_start"() <{level = 10 : i32, message = "sd,td->st"}> : () -> ()
    %cst_70 = arith.constant dense<0.000000e+00> : vector<8x8xf32>
    %169 = tpu.matmul %166, %167, %cst_70 {dimension_numbers = #tpu.dot_dimension_numbers<[1], [1], [0], [0], [0, 0, 1, 0], [], []>} : vector<8x8xf32>, vector<8x8xf32>, vector<8x8xf32> -> vector<8x8xf32>
    "tpu.trace_stop"() : () -> ()
    %cst_71 = arith.constant dense<0xFF800000> : vector<8xf32>
    %170 = vector.multi_reduction <maximumf>, %169, %cst_71 [1] : vector<8x8xf32> to vector<8xf32>
    %171 = vector.shape_cast %170 : vector<8xf32> to vector<8x1xf32>
    %172 = vector.broadcast %171 : vector<8x1xf32> to vector<8x8xf32>
    %173 = arith.subf %169, %172 : vector<8x8xf32>
    %174 = math.exp %173 : vector<8x8xf32>
    %cst_72 = arith.constant dense<0.000000e+00> : vector<8xf32>
    %175 = vector.multi_reduction <add>, %174, %cst_72 [1] : vector<8x8xf32> to vector<8xf32>
    %176 = vector.shape_cast %175 : vector<8xf32> to vector<8x1xf32>
    %cst_73 = arith.constant dense<0.000000e+00> : vector<8x8xf32>
    %177 = tpu.matmul %174, %168, %cst_73 {dimension_numbers = #tpu.dot_dimension_numbers<[1], [0], [0], [1], [0, 0, 1, 1], [], []>} : vector<8x8xf32>, vector<8x8xf32>, vector<8x8xf32> -> vector<8x8xf32>
    %178 = tpu.reciprocal %176 {approx = true} : vector<8x1xf32> -> vector<8x1xf32>
    %179 = vector.broadcast %178 : vector<8x1xf32> to vector<8x8xf32>
    %180 = arith.mulf %177, %179 : vector<8x8xf32>
    %c0_74 = arith.constant 0 : index
    %c8_75 = arith.constant 8 : index
    %181 = vector.load %arg5[%c0_74, %c8_75] : memref<8x32xf32, #tpu.memory_space<vmem>>, vector<8x8xf32>
    tpu.vector_store %arg5[%c0_74, %c8_75], %180 {strides = array<i32>} : memref<8x32xf32, #tpu.memory_space<vmem>>, vector<8x8xf32>,
    %182 = vector.extract_strided_slice %149 {offsets = [0, 16], sizes = [8, 8], strides = [1, 1]} : vector<8x96xf32> to vector<8x8xf32>
    %183 = vector.extract_strided_slice %149 {offsets = [0, 48], sizes = [8, 8], strides = [1, 1]} : vector<8x96xf32> to vector<8x8xf32>
    %184 = vector.extract_strided_slice %149 {offsets = [0, 80], sizes = [8, 8], strides = [1, 1]} : vector<8x96xf32> to vector<8x8xf32>
    "tpu.trace_start"() <{level = 10 : i32, message = "sd,td->st"}> : () -> ()
    %cst_76 = arith.constant dense<0.000000e+00> : vector<8x8xf32>
    %185 = tpu.matmul %182, %183, %cst_76 {dimension_numbers = #tpu.dot_dimension_numbers<[1], [1], [0], [0], [0, 0, 1, 0], [], []>} : vector<8x8xf32>, vector<8x8xf32>, vector<8x8xf32> -> vector<8x8xf32>
    "tpu.trace_stop"() : () -> ()
    %cst_77 = arith.constant dense<0xFF800000> : vector<8xf32>
    %186 = vector.multi_reduction <maximumf>, %185, %cst_77 [1] : vector<8x8xf32> to vector<8xf32>
    %187 = vector.shape_cast %186 : vector<8xf32> to vector<8x1xf32>
    %188 = vector.broadcast %187 : vector<8x1xf32> to vector<8x8xf32>
    %189 = arith.subf %185, %188 : vector<8x8xf32>
    %190 = math.exp %189 : vector<8x8xf32>
    %cst_78 = arith.constant dense<0.000000e+00> : vector<8xf32>
    %191 = vector.multi_reduction <add>, %190, %cst_78 [1] : vector<8x8xf32> to vector<8xf32>
    %192 = vector.shape_cast %191 : vector<8xf32> to vector<8x1xf32>
    %cst_79 = arith.constant dense<0.000000e+00> : vector<8x8xf32>
    %193 = tpu.matmul %190, %184, %cst_79 {dimension_numbers = #tpu.dot_dimension_numbers<[1], [0], [0], [1], [0, 0, 1, 1], [], []>} : vector<8x8xf32>, vector<8x8xf32>, vector<8x8xf32> -> vector<8x8xf32>
    %194 = tpu.reciprocal %192 {approx = true} : vector<8x1xf32> -> vector<8x1xf32>
    %195 = vector.broadcast %194 : vector<8x1xf32> to vector<8x8xf32>
    %196 = arith.mulf %193, %195 : vector<8x8xf32>
    %c0_80 = arith.constant 0 : index
    %c16_81 = arith.constant 16 : index
    %197 = vector.load %arg5[%c0_80, %c16_81] : memref<8x32xf32, #tpu.memory_space<vmem>>, vector<8x8xf32>
    tpu.vector_store %arg5[%c0_80, %c16_81], %196 {strides = array<i32>} : memref<8x32xf32, #tpu.memory_space<vmem>>, vector<8x8xf32>,
    %198 = vector.extract_strided_slice %149 {offsets = [0, 24], sizes = [8, 8], strides = [1, 1]} : vector<8x96xf32> to vector<8x8xf32>
    %199 = vector.extract_strided_slice %149 {offsets = [0, 56], sizes = [8, 8], strides = [1, 1]} : vector<8x96xf32> to vector<8x8xf32>
    %200 = vector.extract_strided_slice %149 {offsets = [0, 88], sizes = [8, 8], strides = [1, 1]} : vector<8x96xf32> to vector<8x8xf32>
    "tpu.trace_start"() <{level = 10 : i32, message = "sd,td->st"}> : () -> ()
    %cst_82 = arith.constant dense<0.000000e+00> : vector<8x8xf32>
    %201 = tpu.matmul %198, %199, %cst_82 {dimension_numbers = #tpu.dot_dimension_numbers<[1], [1], [0], [0], [0, 0, 1, 0], [], []>} : vector<8x8xf32>, vector<8x8xf32>, vector<8x8xf32> -> vector<8x8xf32>
    "tpu.trace_stop"() : () -> ()
    %cst_83 = arith.constant dense<0xFF800000> : vector<8xf32>
    %202 = vector.multi_reduction <maximumf>, %201, %cst_83 [1] : vector<8x8xf32> to vector<8xf32>
    %203 = vector.shape_cast %202 : vector<8xf32> to vector<8x1xf32>
    %204 = vector.broadcast %203 : vector<8x1xf32> to vector<8x8xf32>
    %205 = arith.subf %201, %204 : vector<8x8xf32>
    %206 = math.exp %205 : vector<8x8xf32>
    %cst_84 = arith.constant dense<0.000000e+00> : vector<8xf32>
    %207 = vector.multi_reduction <add>, %206, %cst_84 [1] : vector<8x8xf32> to vector<8xf32>
    %208 = vector.shape_cast %207 : vector<8xf32> to vector<8x1xf32>
    %cst_85 = arith.constant dense<0.000000e+00> : vector<8x8xf32>
    %209 = tpu.matmul %206, %200, %cst_85 {dimension_numbers = #tpu.dot_dimension_numbers<[1], [0], [0], [1], [0, 0, 1, 1], [], []>} : vector<8x8xf32>, vector<8x8xf32>, vector<8x8xf32> -> vector<8x8xf32>
    %210 = tpu.reciprocal %208 {approx = true} : vector<8x1xf32> -> vector<8x1xf32>
    %211 = vector.broadcast %210 : vector<8x1xf32> to vector<8x8xf32>
    %212 = arith.mulf %209, %211 : vector<8x8xf32>
    %c0_86 = arith.constant 0 : index
    %c24_87 = arith.constant 24 : index
    %213 = vector.load %arg5[%c0_86, %c24_87] : memref<8x32xf32, #tpu.memory_space<vmem>>, vector<8x8xf32>
    tpu.vector_store %arg5[%c0_86, %c24_87], %212 {strides = array<i32>} : memref<8x32xf32, #tpu.memory_space<vmem>>, vector<8x8xf32>,
    %c0_88 = arith.constant 0 : index
    %c0_89 = arith.constant 0 : index
    %214 = vector.load %arg5[%c0_88, %c0_89] : memref<8x32xf32, #tpu.memory_space<vmem>>, vector<8x32xf32>
    %c0_90 = arith.constant 0 : index
    %c640 = arith.constant 640 : index
    %215 = vector.load %arg1[%c0_90, %c640] : memref<32x1152xf32, #tpu.memory_space<vmem>>, vector<32x32xf32>
    %cst_91 = arith.constant dense<0.000000e+00> : vector<8x32xf32>
    %216 = tpu.matmul %214, %215, %cst_91 {dimension_numbers = #tpu.dot_dimension_numbers<[1], [0], [0], [1], [0, 0, 1, 1], [], []>} : vector<8x32xf32>, vector<32x32xf32>, vector<8x32xf32> -> vector<8x32xf32>
    %217 = vector.broadcast %139 : vector<1x32xf32> to vector<8x32xf32>
    %218 = arith.addf %216, %217 : vector<8x32xf32>
    %219 = arith.addf %137, %218 : vector<8x32xf32>
    %cst_92 = arith.constant dense<0.000000e+00> : vector<8xf32>
    %220 = vector.multi_reduction <add>, %219, %cst_92 [1] : vector<8x32xf32> to vector<8xf32>
    %221 = vector.shape_cast %220 : vector<8xf32> to vector<8x1xf32>
    %cst_93 = arith.constant 3.200000e+01 : f32
    %222 = vector.broadcast %cst_93 : f32 to vector<8x1xf32>
    %223 = arith.divf %221, %222 : vector<8x1xf32>
    %224 = arith.mulf %219, %219 : vector<8x32xf32>
    %cst_94 = arith.constant dense<0.000000e+00> : vector<8xf32>
    %225 = vector.multi_reduction <add>, %224, %cst_94 [1] : vector<8x32xf32> to vector<8xf32>
    %226 = vector.shape_cast %225 : vector<8xf32> to vector<8x1xf32>
    %cst_95 = arith.constant 3.200000e+01 : f32
    %227 = vector.broadcast %cst_95 : f32 to vector<8x1xf32>
    %228 = arith.divf %226, %227 : vector<8x1xf32>
    %229 = arith.mulf %223, %223 : vector<8x1xf32>
    %230 = arith.subf %228, %229 : vector<8x1xf32>
    %231 = vector.broadcast %223 : vector<8x1xf32> to vector<8x32xf32>
    %232 = arith.subf %219, %231 : vector<8x32xf32>
    %cst_96 = arith.constant 9.99999974E-6 : f32
    %233 = vector.broadcast %cst_96 : f32 to vector<8x1xf32>
    %234 = arith.addf %230, %233 : vector<8x1xf32>
    %235 = math.rsqrt %234 : vector<8x1xf32>
    %236 = vector.broadcast %235 : vector<8x1xf32> to vector<8x32xf32>
    %237 = arith.mulf %232, %236 : vector<8x32xf32>
    %238 = vector.broadcast %142 : vector<1x32xf32> to vector<8x32xf32>
    %239 = arith.mulf %237, %238 : vector<8x32xf32>
    %240 = vector.broadcast %143 : vector<1x32xf32> to vector<8x32xf32>
    %241 = arith.addf %239, %240 : vector<8x32xf32>
    %c0_97 = arith.constant 0 : index
    %c768 = arith.constant 768 : index
    %242 = vector.load %arg1[%c0_97, %c768] : memref<32x1152xf32, #tpu.memory_space<vmem>>, vector<32x256xf32>
    %cst_98 = arith.constant dense<0.000000e+00> : vector<8x256xf32>
    %243 = tpu.matmul %241, %242, %cst_98 {dimension_numbers = #tpu.dot_dimension_numbers<[1], [0], [0], [1], [0, 0, 1, 1], [], []>} : vector<8x32xf32>, vector<32x256xf32>, vector<8x256xf32> -> vector<8x256xf32>
    %244 = vector.broadcast %140 : vector<1x256xf32> to vector<8x256xf32>
    %245 = arith.addf %243, %244 : vector<8x256xf32>
    %cst_99 = arith.constant 0.000000e+00 : f32
    %246 = vector.broadcast %cst_99 : f32 to vector<8x256xf32>
    %247 = arith.maximumf %245, %246 : vector<8x256xf32>
    %c0_100 = arith.constant 0 : index
    %c128_101 = arith.constant 128 : index
    %248 = vector.load %arg2[%c0_100, %c128_101] : memref<256x512xf32, #tpu.memory_space<vmem>>, vector<256x32xf32>
    %cst_102 = arith.constant dense<0.000000e+00> : vector<8x32xf32>
    %249 = tpu.matmul %247, %248, %cst_102 {dimension_numbers = #tpu.dot_dimension_numbers<[1], [0], [0], [1], [0, 0, 1, 1], [], []>} : vector<8x256xf32>, vector<256x32xf32>, vector<8x32xf32> -> vector<8x32xf32>
    %250 = vector.broadcast %141 : vector<1x32xf32> to vector<8x32xf32>
    %251 = arith.addf %249, %250 : vector<8x32xf32>
    %252 = arith.addf %241, %251 : vector<8x32xf32>
    %cst_103 = arith.constant dense<0.000000e+00> : vector<8xf32>
    %253 = vector.multi_reduction <add>, %252, %cst_103 [1] : vector<8x32xf32> to vector<8xf32>
    %254 = vector.shape_cast %253 : vector<8xf32> to vector<8x1xf32>
    %cst_104 = arith.constant 3.200000e+01 : f32
    %255 = vector.broadcast %cst_104 : f32 to vector<8x1xf32>
    %256 = arith.divf %254, %255 : vector<8x1xf32>
    %257 = arith.mulf %252, %252 : vector<8x32xf32>
    %cst_105 = arith.constant dense<0.000000e+00> : vector<8xf32>
    %258 = vector.multi_reduction <add>, %257, %cst_105 [1] : vector<8x32xf32> to vector<8xf32>
    %259 = vector.shape_cast %258 : vector<8xf32> to vector<8x1xf32>
    %cst_106 = arith.constant 3.200000e+01 : f32
    %260 = vector.broadcast %cst_106 : f32 to vector<8x1xf32>
    %261 = arith.divf %259, %260 : vector<8x1xf32>
    %262 = arith.mulf %256, %256 : vector<8x1xf32>
    %263 = arith.subf %261, %262 : vector<8x1xf32>
    %264 = vector.broadcast %256 : vector<8x1xf32> to vector<8x32xf32>
    %265 = arith.subf %252, %264 : vector<8x32xf32>
    %cst_107 = arith.constant 9.99999974E-6 : f32
    %266 = vector.broadcast %cst_107 : f32 to vector<8x1xf32>
    %267 = arith.addf %263, %266 : vector<8x1xf32>
    %268 = math.rsqrt %267 : vector<8x1xf32>
    %269 = vector.broadcast %268 : vector<8x1xf32> to vector<8x32xf32>
    %270 = arith.mulf %265, %269 : vector<8x32xf32>
    %271 = vector.broadcast %144 : vector<1x32xf32> to vector<8x32xf32>
    %272 = arith.mulf %270, %271 : vector<8x32xf32>
    %273 = vector.broadcast %145 : vector<1x32xf32> to vector<8x32xf32>
    %274 = arith.addf %272, %273 : vector<8x32xf32>
    %c16_108 = arith.constant 16 : index
    %c0_109 = arith.constant 0 : index
    %275 = vector.load %arg3[%c16_108, %c0_109] : memref<24x256xf32, #tpu.memory_space<vmem>>, vector<1x128xf32>
    %c17 = arith.constant 17 : index
    %c0_110 = arith.constant 0 : index
    %276 = vector.load %arg3[%c17, %c0_110] : memref<24x256xf32, #tpu.memory_space<vmem>>, vector<1x64xf32>
    %c18 = arith.constant 18 : index
    %c0_111 = arith.constant 0 : index
    %277 = vector.load %arg3[%c18, %c0_111] : memref<24x256xf32, #tpu.memory_space<vmem>>, vector<1x128xf32>
    %c0_112 = arith.constant 0 : index
    %c1024 = arith.constant 1024 : index
    %278 = vector.load %arg1[%c0_112, %c1024] : memref<32x1152xf32, #tpu.memory_space<vmem>>, vector<32x128xf32>
    %cst_113 = arith.constant dense<0.000000e+00> : vector<8x128xf32>
    %279 = tpu.matmul %274, %278, %cst_113 {dimension_numbers = #tpu.dot_dimension_numbers<[1], [0], [0], [1], [0, 0, 1, 1], [], []>} : vector<8x32xf32>, vector<32x128xf32>, vector<8x128xf32> -> vector<8x128xf32>
    %280 = vector.broadcast %275 : vector<1x128xf32> to vector<8x128xf32>
    %281 = arith.addf %279, %280 : vector<8x128xf32>
    %cst_114 = arith.constant 0.000000e+00 : f32
    %282 = vector.broadcast %cst_114 : f32 to vector<8x128xf32>
    %283 = arith.maximumf %281, %282 : vector<8x128xf32>
    %c0_115 = arith.constant 0 : index
    %c256_116 = arith.constant 256 : index
    %284 = vector.load %arg2[%c0_115, %c256_116] : memref<256x512xf32, #tpu.memory_space<vmem>>, vector<128x64xf32>
    %cst_117 = arith.constant dense<0.000000e+00> : vector<8x64xf32>
    %285 = tpu.matmul %283, %284, %cst_117 {dimension_numbers = #tpu.dot_dimension_numbers<[1], [0], [0], [1], [0, 0, 1, 1], [], []>} : vector<8x128xf32>, vector<128x64xf32>, vector<8x64xf32> -> vector<8x64xf32>
    %286 = vector.broadcast %276 : vector<1x64xf32> to vector<8x64xf32>
    %287 = arith.addf %285, %286 : vector<8x64xf32>
    %cst_118 = arith.constant 0.000000e+00 : f32
    %288 = vector.broadcast %cst_118 : f32 to vector<8x64xf32>
    %289 = arith.maximumf %287, %288 : vector<8x64xf32>
    %c0_119 = arith.constant 0 : index
    %c384 = arith.constant 384 : index
    %290 = vector.load %arg2[%c0_119, %c384] : memref<256x512xf32, #tpu.memory_space<vmem>>, vector<64x128xf32>
    %cst_120 = arith.constant dense<0.000000e+00> : vector<8x128xf32>
    %291 = tpu.matmul %289, %290, %cst_120 {dimension_numbers = #tpu.dot_dimension_numbers<[1], [0], [0], [1], [0, 0, 1, 1], [], []>} : vector<8x64xf32>, vector<64x128xf32>, vector<8x128xf32> -> vector<8x128xf32>
    %292 = vector.broadcast %277 : vector<1x128xf32> to vector<8x128xf32>
    %293 = arith.addf %291, %292 : vector<8x128xf32>
    %c0_121 = arith.constant 0 : index
    %c0_122 = arith.constant 0 : index
    %294 = vector.load %arg4[%c0_121, %c0_122] : memref<8x128xf32, #tpu.memory_space<vmem>>, vector<8x128xf32>
    tpu.vector_store %arg4[%c0_121, %c0_122], %293 {strides = array<i32>} : memref<8x128xf32, #tpu.memory_space<vmem>>, vector<8x128xf32>,
    return
  }
}

</mosaic_0001>

<bundles_post_ra>
// kernel: transformer_forward.1
= control target key start
LH: loop header
LB: loop body
LE: loop exit
PB: predicated region body
PF: predicated region fallthrough
CT: control target
= control target key end

     0   :  { %9 = vsyncpa [#allocation4], 0  ;;  %s3496_s0 = inlined_call_operand.vmem [shape: f32[8,32], index: 0, kind: input, shape index: {}]   ;;  %s3497_s1 = inlined_call_operand.hbm [shape: f32[32,1152], index: 1, kind: input, shape index: {}]   ;;  %s3498_s2 = inlined_call_operand.hbm [shape: f32[256,512], index: 2, kind: input, shape index: {}]   ;;  %s3499_s3 = inlined_call_operand.hbm [shape: f32[24,256], index: 3, kind: input, shape index: {}]   ;;  %s3500_s4 = inlined_call_operand.hbm [shape: f32[8,128], index: 4, kind: output, shape index: {}]  }
   0x1   :  { %10 = vsyncpa [#allocation7], 0 }
   0x2   :  { %11 = vsyncpa [#allocation5], 0  ;;  %s3156_s15 = smov [#allocation6]   ;;  %s3062_s19 = scalar_lea.hbm %s3498_s2, 16384 }
   0x3   :  { %s31_s16 = sshll.u32 %s3156_s15, 4  ;;  %p3063_p0 = scmp.ne.s32.totalorder %s3498_s2, %s3062_s19  ;;  %s32_s16 = int_to_ptr.vmem [resolvable:$true] %s31_s16 }
   0x4   :  { %p3066_p1 = scmp.lt.u32.totalorder %s3062_s19, %s3498_s2 }
   0x6   :  { %p3068_p2 = pnand %p3066_p1, %p3063_p0 }
   0x8   :  { %3071 = shalt.err (!%p3068_p2)
}
   0x9   :  { %s3072_s24 = scalar_lea.vmem %s32_s16, 16384  ;;  %p3077_p4 = scmp.lt.s32.totalorder %s32_s16, %s32_s16 }
   0xa   :  { %p3073_p3 = scmp.ne.s32.totalorder %s32_s16, %s3072_s24  ;;  %p3078_p5 = scmp.lt.s32.totalorder %s3072_s24, %s3072_s24 }
   0xc   :  { %p3079_p6 = por %p3078_p5, %p3077_p4 }
   0xe   :  { %p3080_p7 = pnand %p3079_p6, %p3073_p3 }
  0x10   :  { %3083 = shalt.err (!%p3080_p7)
}
  0x11   :  { %s3157_s25 = smov 512   ;;  %s3158_s26 = smov 32  }
  0x12   :  { %37 = dma.hbm_to_vmem [thread:$0]  %s3498_s2, 16384, %s32_s16, [#allocation7], %s3157_s25, %s3157_s25, %s3158_s26  }
  0x13   :  { %s3159_s29 = smov [#allocation3]   ;;  %s3084_s7 = scalar_lea.hbm %s3497_s1, 4608 }
  0x14   :  { %s19_s30 = sshll.u32 %s3159_s29, 4  ;;  %p3085_p8 = scmp.ne.s32.totalorder %s3497_s1, %s3084_s7  ;;  %s20_s30 = int_to_ptr.vmem [resolvable:$true] %s19_s30 }
  0x15   :  { %p3088_p9 = scmp.lt.u32.totalorder %s3084_s7, %s3497_s1 }
  0x17   :  { %p3090_p10 = pnand %p3088_p9, %p3085_p8 }
  0x19   :  { %3093 = shalt.err (!%p3090_p10)
}
  0x1a   :  { %s3094_s12 = scalar_lea.vmem %s20_s30, 4608  ;;  %p3099_p12 = scmp.lt.s32.totalorder %s20_s30, %s20_s30 }
  0x1b   :  { %p3095_p11 = scmp.ne.s32.totalorder %s20_s30, %s3094_s12  ;;  %p3100_p13 = scmp.lt.s32.totalorder %s3094_s12, %s3094_s12 }
  0x1d   :  { %p3101_p0 = por %p3100_p13, %p3099_p12 }
  0x1f   :  { %p3102_p1 = pnand %p3101_p0, %p3095_p11 }
  0x21   :  { %3105 = shalt.err (!%p3102_p1)
}
  0x22   :  { %s3160_s2 = smov 1152   ;;  %s3161_s13 = smov 72  }
  0x23   :  { %25 = dma.hbm_to_vmem [thread:$0]  %s3497_s1, 4608, %s20_s30, [#allocation4], %s3160_s2, %s3160_s2, %s3161_s13  }
  0x24   :  { %s3162_s16 = smov [#allocation8]   ;;  %s3106_s20 = scalar_lea.hbm %s3499_s3, 768 }
  0x25   :  { %s43_s17 = sshll.u32 %s3162_s16, 4  ;;  %p3107_p2 = scmp.ne.s32.totalorder %s3499_s3, %s3106_s20  ;;  %s44_s17 = int_to_ptr.vmem [resolvable:$true] %s43_s17 }
  0x26   :  { %p3110_p3 = scmp.lt.u32.totalorder %s3106_s20, %s3499_s3 }
  0x28   :  { %p3112_p4 = pnand %p3110_p3, %p3107_p2 }
  0x2a   :  { %3115 = shalt.err (!%p3112_p4)
}
  0x2b   :  { %s3116_s25 = scalar_lea.vmem %s44_s17, 768  ;;  %p3121_p6 = scmp.lt.s32.totalorder %s44_s17, %s44_s17 }
  0x2c   :  { %p3117_p5 = scmp.ne.s32.totalorder %s44_s17, %s3116_s25  ;;  %p3122_p7 = scmp.lt.s32.totalorder %s3116_s25, %s3116_s25 }
  0x2e   :  { %p3123_p8 = por %p3122_p7, %p3121_p6 }
  0x30   :  { %p3124_p9 = pnand %p3123_p8, %p3117_p5 }
  0x32   :  { %3127 = shalt.err (!%p3124_p9)
}
  0x33   :  { %s3163_s1 = smov 256   ;;  %s3164_s26 = smov 16  }
  0x34   :  { %49 = dma.hbm_to_vmem [thread:$0]  %s3499_s3, 768, %s44_s17, [#allocation7], %s3163_s1, %s3163_s1, %s3164_s26  }
  0x35   :  { %3150 = dma.done.wait [#allocation4], 4608  }
  0x36   :  { %3151 = vsyncadd [#allocation4], 4294962688 }
  0x37   :  { %3152 = dma.done.wait [#allocation7], 17152  }
  0x38   :  { %3153 = vsyncadd [#allocation7], 4294950144  ;;  %v3165_v0 = vmov 0.0|0.0   ;;  %vm3166_vm0 = vmmov 0   ;;  %v3167_v1 = vmov 0.0   ;;  %v69_v2 = vld [vmem:[#allocation3] sm:$0xff] }
  0x39   :  { %2851 = vmatprep.subr.bf16.mxu0 %v3165_v0  ;;  %2670 = vmatprep.mubr.msk.f32.mxu0 %vm3166_vm0, %v3167_v1  ;;  %v70_v3 = vld [vmem:[#allocation3 + $0x48] sm:$0xff]  ;;  %v71_v4 = vld [vmem:[#allocation3 + $0x90] sm:$0xff]  ;;  %v72_v6 = vld [vmem:[#allocation3 + $0xd8] sm:$0xff]  ;;  %vm73_vm1 = vcmask 261120   ;;  %s3168_s30 = smov 64   ;;  %s3170_s5 = smov 88  }
  0x3a   :  { %2673 = vmatprep.subr.mxu1 %v3167_v1  ;;  %2675 = vmatprep.mubr.msk.f32.mxu1 %vm3166_vm0, %v3167_v1  ;;  %v2852_v5 = vpack.c.bf16 %v70_v3, %v69_v2  ;;  %v2855_v7 = vpack.c.bf16 %v72_v6, %v71_v4  ;;  %v3254_v8 = vld [vmem:[%s3496_s0] sm:$0xff]  ;;  %v60_v9 = vld [vmem:[#allocation8] ss:$0 sm:$0xff]  ;;  %s3169_s0 = smov 96   ;;  %s3171_s6 = smov 120   ;;  %vm150_vm2 = vcmask 64512  }
  0x3b   :  { %s3172_s7 = smov 80   ;;  %s3173_s8 = smov 112   ;;  %v827_v2 = vld [vmem:[#allocation3 + $0x8] sm:$0xff]  ;;  %v828_v3 = vld [vmem:[#allocation3 + $0x50] sm:$0xff]  ;;  %v830_v6 = vld [vmem:[#allocation3 + $0xe0] sm:$0xff]  ;;  %vm482_vm3 = vcmask 130112  }
  0x3c   :  { %2853 = vmatpush3.bf16.msra.mxu0 %v2852_v5  ;;  %s3174_s9 = smov 104   ;;  %s3175_s10 = smov 56   ;;  %v2858_v4 = vpack.c.bf16 %v828_v3, %v827_v2  ;;  %v829_v5 = vld [vmem:[#allocation3 + $0x98] sm:$0xff]  ;;  %vm653_vm4 = vcmask 195712   ;;  %vm824_vm5 = vcmask 261312   ;;  %v1024_v3 = vld [vmem:[#allocation6 + $0xc0] sm:$0xff] }
  0x3d   :  { %2854 = vmatprep.subr.bf16.mxu0 %v3165_v0  ;;  %s3176_s11 = smov 40   ;;  %s3177_s12 = smov 48   ;;  %vm2386_vm6 = vcmask 523264  }
  0x3e   :  { %s3178_s2 = smov 8   ;;  %s3179_s14 = smov 24  }
  0x40   :  { %2856 = vmatpush3.bf16.msra.mxu0 %v2855_v7 }
  0x41   :  { %2693 = vmatprep.subr.mxu0 %v3167_v1 }
  0x43   :  { %2671 = vmatmul.mubr.msk.f32.vlgmr.msra.gmra.mrb[0].mxu0 %vm73_vm1, %v3254_v8 }
  0x44   :  { %2695 = vmatprep.mubr.msk.f32.mxu0 %vm3166_vm0, %v3167_v1 }
 0x116   :  { %v143_v10 = vpop.f32.mrb[0].mxu0 }
 0x117   :  { %v3261_v11 = vadd.f32 %v143_v10, %v60_v9  ;;  %v2672_v12 = vpop.f32.mrb[1].mxu0  ;;  %v2861_v10 = vpack.c.bf16 %v830_v6, %v829_v5  ;;  %v1042_v5 = vld [vmem:[#allocation6 + $0x300] sm:$0xff] }
 0x118   :  { %v1043_v6 = vld [vmem:[#allocation6 + $0x320] sm:$0xff] }
 0x119   :  { %234 = vrot.lane.b32.xlu1 %v3261_v11, %s3168_s30  ;;  %148 = vrot.lane.b32.xlu0 %v3261_v11, %s3169_s0 }
 0x11d   :  { %315 = vrot.lane.b32.xlu1 %v3261_v11, %s3170_s5 }
 0x121   :  { %313 = vrot.lane.b32.xlu1 %v3261_v11, %s3171_s6 }
 0x125   :  { %486 = vrot.lane.b32.xlu1 %v3261_v11, %s3172_s7 }
 0x129   :  { %484 = vrot.lane.b32.xlu1 %v3261_v11, %s3173_s8 }
 0x12d   :  { %657 = vrot.lane.b32.xlu1 %v3261_v11, %s3161_s13 }
 0x131   :  { %655 = vrot.lane.b32.xlu1 %v3261_v11, %s3174_s9 }
 0x18b   :  { %v235_v13 = vpop.permute.xlu1 %234  ;;  %v149_v14 = vpop.permute.xlu0 %148 }
 0x18c   :  { %2674 = vmatpush3.xpose.msk.msra.mxu1 %vm150_vm2, %v149_v14 }
 0x18d   :  { %2678 = vmatprep.subr.mxu1 %v3167_v1 }
 0x18f   :  { %v316_v15 = vpop.permute.xlu1 %315  ;;  %2676 = vmatmul.mubr.msk.f32.vlgmr.msra.gmra.mrb[0].mxu1 %vm150_vm2, %v3261_v11 }
 0x190   :  { %2679 = vmatpush3.msra.mxu1 %v235_v13  ;;  %2680 = vmatprep.mubr.msk.f32.mxu1 %vm3166_vm0, %v3167_v1 }
 0x191   :  { %2683 = vmatprep.subr.mxu1 %v3167_v1 }
 0x193   :  { %v314_v16 = vpop.permute.xlu1 %313 }
 0x197   :  { %v487_v17 = vpop.permute.xlu1 %486 }
 0x198   :  { %2694 = vmatpush3.xpose.msk.msra.mxu0 %vm150_vm2, %v487_v17 }
 0x199   :  { %2703 = vmatprep.subr.mxu0 %v3167_v1 }
 0x19b   :  { %v485_v18 = vpop.permute.xlu1 %484 }
 0x19c   :  { %2696 = vmatmul.mubr.msk.f32.vlgmr.msra.gmra.mrb[2].mxu0 %vm150_vm2, %v485_v18 }
 0x19d   :  { %2705 = vmatprep.mubr.msk.f32.mxu0 %vm3166_vm0, %v3167_v1 }
 0x19f   :  { %v658_v19 = vpop.permute.xlu1 %657 }
 0x1a0   :  { %2704 = vmatpush3.xpose.msk.msra.mxu0 %vm150_vm2, %v658_v19 }
 0x1a1   :  { %2857 = vmatprep.subr.bf16.mxu0 %v3165_v0 }
 0x1a3   :  { %v656_v20 = vpop.permute.xlu1 %655 }
 0x1a4   :  { %2706 = vmatmul.mubr.msk.f32.vlgmr.msra.gmra.mrb[4].mxu0 %vm150_vm2, %v656_v20 }
 0x1a5   :  { %2721 = vmatprep.mubr.msk.f32.mxu0 %vm3166_vm0, %v3167_v1  ;;  %2859 = vmatpush3.bf16.msra.mxu0 %v2858_v4  ;;  %v1025_v4 = vld [vmem:[#allocation6 + $0xe0] sm:$0xff] }
 0x1a6   :  { %2860 = vmatprep.subr.bf16.mxu0 %v3165_v0 }
 0x1a9   :  { %2862 = vmatpush3.bf16.msra.mxu0 %v2861_v10  ;;  %v1026_v10 = vld [vmem:[#allocation6 + $0x100] sm:$0xff] }
 0x262   :  { %v221_v21 = vpop.f32.mrb[0].mxu1 }
 0x263   :  { %v2677_v22 = vpop.f32.mrb[1].mxu1  ;;  %v225_v23 = vsel %vm150_vm2, %v221_v21, -inf }
 0x264   :  { %226 = vmax.xlane.f32.xlu0 %v225_v23 }
 0x26f   :  { %v558_v24 = vpop.f32.mrb[2].mxu0 }
 0x270   :  { %v2697_v25 = vpop.f32.mrb[3].mxu0  ;;  %v562_v28 = vsel %vm150_vm2, %v558_v24, -inf }
 0x271   :  { %v61_v25 = vld [vmem:[#allocation8 + $0x1] ss:$0 sm:$0xff] }
 0x277   :  { %v729_v26 = vpop.f32.mrb[4].mxu0 }
 0x278   :  { %v2707_v27 = vpop.f32.mrb[5].mxu0  ;;  %v733_v29 = vsel %vm150_vm2, %v729_v26, -inf }
 0x27a   :  { %400 = vrot.lane.b32.xlu0 %v3261_v11, %s3175_s10 }
 0x299   :  { %563 = vmax.xlane.f32.xlu0 %v562_v28 }
 0x29d   :  { %734 = vmax.xlane.f32.xlu0 %v733_v29 }
 0x2b3   :  { %742 = vrot.lane.b32.xlu0 %v3261_v11, %s3176_s11 }
 0x2f1   :  { %v227_v30 = vpop.xlane.xlu0 %226 }
 0x2f2   :  { %v228_v31 = vsub.f32 %v221_v21, %v227_v30 }
 0x2f4   :  { %v229_v32 = vmul.f32 1.442695, %v228_v31 }
 0x2f5   :  { %v401_v34 = vpop.permute.xlu0 %400 }
 0x2f6   :  { %3022 = vpow2.f32 %v229_v32 }
 0x300   :  { %v3023_v33 = vpop.eup %3022 }
 0x301   :  { %2681 = vmatmul.mubr.msk.f32.vlgmr.msra.gmra.mrb[2].mxu1 %vm150_vm2, %v3023_v33  ;;  %v231_v57 = vsel %vm150_vm2, %v3023_v33, 0.0  ;;  %v924_v33 = vld [vmem:[#allocation3 + $0x18] sm:$0xff] }
 0x302   :  { %2684 = vmatpush3.xpose.msk.msra.mxu1 %vm150_vm2, %v316_v15  ;;  %2685 = vmatprep.mubr.msk.f32.mxu1 %vm3166_vm0, %v3167_v1 }
 0x303   :  { %2688 = vmatprep.subr.mxu1 %v3167_v1 }
 0x305   :  { %2686 = vmatmul.mubr.msk.f32.vlgmr.msra.gmra.mrb[4].mxu1 %vm150_vm2, %v314_v16 }
 0x306   :  { %2689 = vmatpush3.msra.mxu1 %v401_v34  ;;  %2690 = vmatprep.mubr.msk.f32.mxu1 %vm3166_vm0, %v3167_v1  ;;  %v926_v34 = vld [vmem:[#allocation3 + $0x60] sm:$0xff] }
 0x307   :  { %2698 = vmatprep.subr.mxu1 %v3167_v1 }
 0x326   :  { %v564_v40 = vpop.xlane.xlu0 %563 }
 0x327   :  { %v565_v41 = vsub.f32 %v558_v24, %v564_v40  ;;  %v927_v40 = vld [vmem:[#allocation3 + $0xa0] sm:$0xff] }
 0x329   :  { %v566_v42 = vmul.f32 1.442695, %v565_v41 }
 0x32a   :  { %v735_v45 = vpop.xlane.xlu0 %734 }
 0x32b   :  { %3024 = vpow2.f32 %v566_v42  ;;  %v736_v46 = vsub.f32 %v729_v26, %v735_v45  ;;  %v929_v42 = vld [vmem:[#allocation3 + $0xe8] sm:$0xff]  ;;  %v1035_v45 = vld [vmem:[#allocation6 + $0x220] sm:$0xff] }
 0x32d   :  { %v737_v49 = vmul.f32 1.442695, %v736_v46  ;;  %v1018_v46 = vld [vmem:[#allocation6] sm:$0xff] }
 0x32e   :  { %v743_v55 = vpop.permute.xlu0 %742 }
 0x335   :  { %v3025_v43 = vpop.eup %3024 }
 0x336   :  { %v568_v44 = vsel %vm150_vm2, %v3025_v43, 0.0 }
 0x3d4   :  { %v306_v35 = vpop.f32.mrb[2].mxu1 }
 0x3d5   :  { %v2682_v36 = vpop.f32.mrb[3].mxu1 }
 0x3d6   :  { %v923_v36 = vld [vmem:[#allocation3 + $0x10] sm:$0xff] }
 0x3d8   :  { %v387_v37 = vpop.f32.mrb[4].mxu1 }
 0x3d9   :  { %v2687_v38 = vpop.f32.mrb[5].mxu1  ;;  %v391_v39 = vsel %vm150_vm2, %v387_v37, -inf }
 0x3da   :  { %392 = vmax.xlane.f32.xlu1 %v391_v39  ;;  %v930_v39 = vld [vmem:[#allocation3 + $0xf0] sm:$0xff] }
 0x3eb   :  { %571 = vrot.lane.b32.xlu1 %v3261_v11, %s3177_s12 }
 0x40f   :  { %569 = vadd.xlane.f32.xlu1 %v568_v44  ;;  %v1034_v44 = vld [vmem:[#allocation6 + $0x200] sm:$0xff] }
 0x467   :  { %v393_v47 = vpop.xlane.xlu1 %392 }
 0x468   :  { %v394_v48 = vsub.f32 %v387_v37, %v393_v47  ;;  %v925_v37 = vld [vmem:[#allocation3 + $0x58] sm:$0xff]  ;;  %v2871_v47 = vpack.c.bf16 %v1035_v45, %v1034_v44  ;;  %v932_v44 = vlaneseq }
 0x469   :  { %v2865_v38 = vpack.c.bf16 %v925_v37, %v923_v36  ;;  %v1030_v37 = vld [vmem:[#allocation6 + $0x180] sm:$0xff] }
 0x46a   :  { %v395_v50 = vmul.f32 1.442695, %v394_v48  ;;  %v1019_v48 = vld [vmem:[#allocation6 + $0x20] sm:$0xff]  ;;  %2872 = vmatprep.subr.bf16.mxu0 %v2871_v47  ;;  %v3351_v45 = vshrl.u32 %v932_v44, 7 }
 0x46b   :  { %v572_v52 = vpop.permute.xlu1 %571  ;;  %v63_v47 = vld [vmem:[#allocation8 + $0x2] ss:$8 sm:$0x3] }
 0x46c   :  { %3026 = vpow2.f32 %v395_v50  ;;  %v1037_v50 = vld [vmem:[#allocation6 + $0x260] sm:$0xff] }
 0x46d   :  { %3028 = vpow2.f32 %v737_v49  ;;  %v1036_v49 = vld [vmem:[#allocation6 + $0x240] sm:$0xff] }
 0x476   :  { %v3027_v51 = vpop.eup %3026 }
 0x477   :  { %2691 = vmatmul.mubr.msk.f32.vlgmr.msra.gmra.mrb[6].mxu1 %vm150_vm2, %v3027_v51  ;;  %v397_v53 = vsel %vm150_vm2, %v3027_v51, 0.0  ;;  %v3029_v54 = vpop.eup %3028  ;;  %v2873_v51 = vpack.c.bf16 %v1019_v48, %v1018_v46  ;;  %v934_v46 = vsub.s32 0, %v3351_v45  ;;  %v938_v48 = vsub.s32 1, %v3351_v45 }
 0x478   :  { %2699 = vmatpush3.msra.mxu1 %v572_v52  ;;  %398 = vadd.xlane.f32.xlu0 %v397_v53  ;;  %v739_v56 = vsel %vm150_vm2, %v3029_v54, 0.0  ;;  %v2875_v52 = vpack.c.bf16 %v1037_v50, %v1036_v49  ;;  %v1020_v53 = vld [vmem:[#allocation6 + $0x40] sm:$0xff] }
 0x479   :  { %2700 = vmatprep.mubr.msk.f32.mxu1 %vm3166_vm0, %v3167_v1  ;;  %2708 = vmatprep.subr.mxu1 %v3167_v1  ;;  %v935_v49 = vrot.slane %v63_v47, %v934_v46  ;;  %v939_v50 = vrot.slane %v63_v47, %v938_v48 }
 0x47b   :  { %2701 = vmatmul.mubr.msk.f32.vlgmr.msra.gmra.mrb[8].mxu1 %vm150_vm2, %v3025_v43  ;;  %v2869_v43 = vpack.c.bf16 %v929_v42, %v927_v40  ;;  %v1049_v40 = vld [vmem:[#allocation6 + $0x3e0] sm:$0xff] }
 0x47c   :  { %2709 = vmatpush3.msra.mxu1 %v743_v55  ;;  %740 = vadd.xlane.f32.xlu0 %v739_v56  ;;  %v1038_v55 = vld [vmem:[#allocation6 + $0x280] sm:$0xff] }
 0x47d   :  { %2710 = vmatprep.mubr.msk.f32.mxu1 %vm3166_vm0, %v3167_v1  ;;  %v1039_v56 = vld [vmem:[#allocation6 + $0x2a0] sm:$0xff] }
 0x47e   :  { %v1032_v42 = vld [vmem:[#allocation6 + $0x1c0] sm:$0xff] }
 0x47f   :  { %2711 = vmatmul.mubr.msk.f32.vlgmr.msra.gmra.mrb[10].mxu1 %vm150_vm2, %v3029_v54  ;;  %v1021_v54 = vld [vmem:[#allocation6 + $0x60] sm:$0xff] }
 0x480   :  { %232 = vadd.xlane.f32.xlu0 %v231_v57  ;;  %1009 = vmatprep.mubr.f32.mxu1 %v3167_v1  ;;  %v2877_v57 = vpack.c.bf16 %v1021_v54, %v1020_v53 }
 0x49c   :  { %v570_v63 = vpop.xlane.xlu1 %569 }
 0x505   :  { %v399_v58 = vpop.xlane.xlu0 %398 }
 0x509   :  { %v741_v59 = vpop.xlane.xlu0 %740 }
 0x50d   :  { %v233_v60 = vpop.xlane.xlu0 %232 }
 0x50e   :  { %3030 = vrcp.f32 %v233_v60  ;;  %v1023_v60 = vld [vmem:[#allocation6 + $0xa0] sm:$0xff] }
 0x50f   :  { %3032 = vrcp.f32 %v399_v58  ;;  %v2879_v58 = vpack.c.bf16 %v1039_v56, %v1038_v55 }
 0x510   :  { %3034 = vrcp.f32 %v570_v63 }
 0x511   :  { %3036 = vrcp.f32 %v741_v59  ;;  %v1022_v59 = vld [vmem:[#allocation6 + $0x80] sm:$0xff] }
 0x512   :  { %v2881_v63 = vpack.c.bf16 %v1023_v60, %v1022_v59 }
 0x518   :  { %v3031_v61 = vpop.eup %3030 }
 0x519   :  { %v311_v62 = vmul.f32 %v3031_v61, %v306_v35  ;;  %v3033_v7 = vpop.eup %3032  ;;  %v2863_v35 = vpack.c.bf16 %v926_v34, %v924_v33  ;;  %v1040_v61 = vld [vmem:[#allocation6 + $0x2c0] sm:$0xff] }
 0x51a   :  { %v3035_v13 = vpop.eup %3034  ;;  %v66_v34 = vld [vmem:[#allocation8 + $0x5] ss:$0 sm:$0xff] }
 0x51b   :  { %312 = vst.msk [vmem:[#allocation2] sm:$0xff] %vm150_vm2, %v311_v62  ;;  %v3037_v17 = vpop.eup %3036  ;;  %2864 = vmatprep.subr.bf16.mxu1 %v2863_v35  ;;  %v1041_v62 = vld [vmem:[#allocation6 + $0x2e0] sm:$0xff] }
 0x51c   :  { %2866 = vmatpush1.bf16.msra.mxu1 %v2865_v38  ;;  %v2883_v2 = vpack.c.bf16 %v1041_v62, %v1040_v61  ;;  %v1031_v38 = vld [vmem:[#allocation6 + $0x1a0] sm:$0xff] }
 0x54a   :  { %v472_v9 = vpop.f32.mrb[6].mxu1 }
 0x54b   :  { %v477_v11 = vmul.f32 %v3033_v7, %v472_v9  ;;  %v2692_v12 = vpop.f32.mrb[7].mxu1  ;;  %v2885_v7 = vpack.c.bf16 %v1025_v4, %v1024_v3  ;;  %v2887_v9 = vpack.c.bf16 %v1043_v6, %v1042_v5  ;;  %v1147_v4 = vld [vmem:[#allocation3 + $0x20] sm:$0xff]  ;;  %v1148_v5 = vld [vmem:[#allocation3 + $0x68] sm:$0xff] }
 0x54c   :  { %v1044_v12 = vld [vmem:[#allocation6 + $0x340] sm:$0xff]  ;;  %v2904_v6 = vpack.c.bf16 %v1148_v5, %v1147_v4 }
 0x54d   :  { %479 = vrot.lane.b32.xlu0 %v477_v11, %s3178_s2  ;;  %v1027_v11 = vld [vmem:[#allocation6 + $0x120] sm:$0xff] }
 0x54e   :  { %v643_v14 = vpop.f32.mrb[8].mxu1 }
 0x54f   :  { %v648_v15 = vmul.f32 %v3035_v13, %v643_v14  ;;  %v2702_v16 = vpop.f32.mrb[9].mxu1  ;;  %v1045_v13 = vld [vmem:[#allocation6 + $0x360] sm:$0xff]  ;;  %v2889_v14 = vpack.c.bf16 %v1027_v11, %v1026_v10 }
 0x550   :  { %v1028_v16 = vld [vmem:[#allocation6 + $0x140] sm:$0xff] }
 0x551   :  { %650 = vrot.lane.b32.xlu1 %v648_v15, %s3164_s26  ;;  %v2891_v15 = vpack.c.bf16 %v1045_v13, %v1044_v12 }
 0x552   :  { %v814_v18 = vpop.f32.mrb[10].mxu1 }
 0x553   :  { %v819_v19 = vmul.f32 %v3037_v17, %v814_v18  ;;  %v2712_v20 = vpop.f32.mrb[11].mxu1  ;;  %v1029_v17 = vld [vmem:[#allocation6 + $0x160] sm:$0xff] }
 0x554   :  { %v1046_v18 = vld [vmem:[#allocation6 + $0x380] sm:$0xff]  ;;  %v2893_v20 = vpack.c.bf16 %v1029_v17, %v1028_v16 }
 0x555   :  { %821 = vrot.lane.b32.xlu0 %v819_v19, %s3179_s14  ;;  %v1047_v19 = vld [vmem:[#allocation6 + $0x3a0] sm:$0xff] }
 0x5bf   :  { %v480_v21 = vpop.permute.xlu0 %479 }
 0x5c0   :  { %483 = vst.msk [vmem:[#allocation2] sm:$0xff] %vm482_vm3, %v480_v21  ;;  %v2895_v21 = vpack.c.bf16 %v1047_v19, %v1046_v18 }
 0x5c3   :  { %v651_v22 = vpop.permute.xlu1 %650 }
 0x5c4   :  { %654 = vst.msk [vmem:[#allocation2] sm:$0xff] %vm653_vm4, %v651_v22 }
 0x5c7   :  { %v822_v23 = vpop.permute.xlu0 %821 }
 0x5c8   :  { %825 = vst.msk [vmem:[#allocation2] sm:$0xff] %vm824_vm5, %v822_v23 }
 0x5cf   :  { %v826_v24 = vld [vmem:[#allocation2] sm:$0xff] }
 0x5d0   :  { %2722 = vmatmul.mubr.msk.f32.vlgmr.msra.gmra.mrb[6].mxu0 %vm73_vm1, %v826_v24 }
 0x5d1   :  { %2874 = vmatpush3.bf16.msra.mxu0 %v2873_v51 }
 0x5d2   :  { %2876 = vmatprep.subr.bf16.mxu0 %v2875_v52 }
 0x5d5   :  { %2878 = vmatpush3.bf16.msra.mxu0 %v2877_v57 }
 0x5d6   :  { %2880 = vmatprep.subr.bf16.mxu0 %v2879_v58  ;;  %v64_v58 = vld [vmem:[#allocation8 + $0x3] ss:$0 sm:$0xff] }
 0x5d9   :  { %2882 = vmatpush3.bf16.msra.mxu0 %v2881_v63 }
 0x5da   :  { %2884 = vmatprep.subr.bf16.mxu0 %v2883_v2 }
 0x5dd   :  { %2886 = vmatpush3.bf16.msra.mxu0 %v2885_v7  ;;  %v1149_v7 = vld [vmem:[#allocation3 + $0xb0] sm:$0xff] }
 0x5de   :  { %2888 = vmatprep.subr.bf16.mxu0 %v2887_v9  ;;  %v1150_v9 = vld [vmem:[#allocation3 + $0xf8] sm:$0xff] }
 0x5df   :  { %v2907_v10 = vpack.c.bf16 %v1150_v9, %v1149_v7 }
 0x5e1   :  { %2890 = vmatpush3.bf16.msra.mxu0 %v2889_v14 }
 0x5e2   :  { %2892 = vmatprep.subr.bf16.mxu0 %v2891_v15 }
 0x5e5   :  { %2894 = vmatpush3.bf16.msra.mxu0 %v2893_v20  ;;  %v67_v20 = vld [vmem:[#allocation8 + $0x6] ss:$0 sm:$0xff] }
 0x5e6   :  { %2896 = vmatprep.subr.bf16.mxu0 %v2895_v21 }
 0x6a3   :  { %v900_v26 = vpop.f32.mrb[6].mxu0 }
 0x6a4   :  { %v901_v27 = vadd.f32 %v900_v26, %v61_v25  ;;  %v2723_v28 = vpop.f32.mrb[7].mxu0 }
 0x6a6   :  { %v3338_v29 = vadd.f32 %v901_v27, %v3254_v8  ;;  %v928_v8 = vld [vmem:[#allocation3 + $0xa8] sm:$0xff] }
 0x6a7   :  { %v2867_v41 = vpack.c.bf16 %v930_v39, %v928_v8  ;;  %v2897_v8 = vpack.c.bf16 %v1031_v38, %v1030_v37  ;;  %v1048_v39 = vld [vmem:[#allocation6 + $0x3c0] sm:$0xff] }
 0x6a8   :  { %v905_v30 = vsel %vm73_vm1, %v3338_v29, 0.0  ;;  %v910_v31 = vmul.f32 %v3338_v29, %v3338_v29 }
 0x6a9   :  { %906 = vadd.xlane.f32.xlu0 %v905_v30  ;;  %2868 = vmatprep.subr.bf16.mxu1 %v2867_v41  ;;  %v2899_v41 = vpack.c.bf16 %v1049_v40, %v1048_v39 }
 0x6aa   :  { %v911_v32 = vsel %vm73_vm1, %v910_v31, 0.0  ;;  %2870 = vmatpush1.bf16.msra.mxu1 %v2869_v43  ;;  %2898 = vmatpush3.bf16.msra.mxu0 %v2897_v8 }
 0x6ab   :  { %912 = vadd.xlane.f32.xlu1 %v911_v32  ;;  %2903 = vmatprep.subr.bf16.mxu1 %v3165_v0  ;;  %v65_v32 = vld [vmem:[#allocation8 + $0x4] ss:$0 sm:$0xff] }
 0x6ac   :  { %2900 = vmatprep.subr.bf16.mxu0 %v2899_v41 }
 0x736   :  { %v907_v22 = vpop.xlane.xlu0 %906 }
 0x737   :  { %v909_v23 = vmul.f32 0.03125, %v907_v22  ;;  %v68_v22 = vld [vmem:[#allocation8 + $0x7] ss:$0 sm:$0xff] }
 0x738   :  { %v913_v24 = vpop.xlane.xlu1 %912 }
 0x739   :  { %v915_v25 = vmul.f32 %v909_v23, %v909_v23  ;;  %v914_v26 = vmul.f32 0.03125, %v913_v24  ;;  %v917_v30 = vsub.f32 %v3338_v29, %v909_v23  ;;  %v1033_v29 = vld [vmem:[#allocation6 + $0x1e0] sm:$0xff] }
 0x73a   :  { %v2901_v43 = vpack.c.bf16 %v1033_v29, %v1032_v42 }
 0x73b   :  { %v916_v27 = vsub.f32 %v914_v26, %v915_v25  ;;  %v1138_v25 = vld [vmem:[#allocation8 + $0x10] ss:$0 sm:$0xff] }
 0x73c   :  { %2902 = vmatpush3.bf16.msra.mxu0 %v2901_v43 }
 0x73d   :  { %v918_v28 = vadd.f32 1e-05, %v916_v27  ;;  %2765 = vmatprep.subr.mxu0 %v3167_v1 }
 0x73f   :  { %3038 = vrsqrt.f32 %v918_v28 }
 0x749   :  { %v3039_v31 = vpop.eup %3038 }
 0x74a   :  { %v920_v33 = vmul.f32 %v3039_v31, %v917_v30 }
 0x74c   :  { %v921_v35 = vmul.f32 %v920_v33, %v65_v32 }
 0x74e   :  { %v922_v36 = vadd.f32 %v921_v35, %v66_v34 }
 0x750   :  { %2491 = vmatmul.mubr.msk.f32.vlgmr.msra.gmra.mrb[12].mxu1 %vm73_vm1, %v922_v36 }
 0x751   :  { %2732 = vmatprep.mubr.msk.f32.mxu1 %vm3166_vm0, %v3167_v1  ;;  %2905 = vmatpush3.bf16.msra.mxu1 %v2904_v6 }
 0x752   :  { %2906 = vmatprep.subr.bf16.mxu1 %v3165_v0 }
 0x755   :  { %2908 = vmatpush3.bf16.msra.mxu1 %v2907_v10 }
 0x756   :  { %2735 = vmatprep.subr.mxu1 %v3167_v1 }
 0x823   :  { %v1011_v51 = vpop.f32.mrb[12].mxu1 }
 0x824   :  { %v1012_v52 = vadd.f32 %v1011_v51, %v935_v49  ;;  %v1013_v53 = vpop.f32.mrb[13].mxu1 }
 0x825   :  { %v1014_v54 = vadd.f32 %v1013_v53, %v939_v50 }
 0x826   :  { %v1016_v56 = vmax.f32 %v1012_v52, 0.0 }
 0x827   :  { %v1017_v55 = vmax.f32 %v1014_v54, 0.0 }
 0x829   :  { %1114 = vmatprep.mubr.f32.mxu0 %v1017_v55 }
 0x82a   :  { %1115 = vmatmul.mubr.f32.vlgmr.msra.gmra.mrb[8].mxu0 %v1016_v56 }
 0x82b   :  { %2767 = vmatprep.mubr.msk.f32.mxu0 %vm3166_vm0, %v3167_v1 }
 0x8fd   :  { %v2567_v57 = vpop.f32.mrb[8].mxu0 }
 0x8fe   :  { %v2568_v59 = vpop.f32.mrb[9].mxu0 }
 0x8ff   :  { %v2569_v60 = vadd.f32 %v2568_v59, %v2567_v57 }
 0x901   :  { %v1117_v61 = vadd.f32 %v2569_v60, %v64_v58 }
 0x903   :  { %v1120_v62 = vadd.f32 %v1117_v61, %v922_v36 }
 0x905   :  { %v1121_v63 = vsel %vm73_vm1, %v1120_v62, 0.0  ;;  %v1125_v2 = vmul.f32 %v1120_v62, %v1120_v62 }
 0x906   :  { %1122 = vadd.xlane.f32.xlu0 %v1121_v63 }
 0x907   :  { %v1126_v3 = vsel %vm73_vm1, %v1125_v2, 0.0 }
 0x90a   :  { %1127 = vadd.xlane.f32.xlu0 %v1126_v3 }
 0x993   :  { %v1123_v11 = vpop.xlane.xlu0 %1122 }
 0x994   :  { %v1124_v12 = vmul.f32 0.03125, %v1123_v11 }
 0x996   :  { %v1130_v14 = vmul.f32 %v1124_v12, %v1124_v12  ;;  %v1132_v18 = vsub.f32 %v1120_v62, %v1124_v12 }
 0x997   :  { %v1128_v13 = vpop.xlane.xlu0 %1127 }
 0x998   :  { %v1129_v15 = vmul.f32 0.03125, %v1128_v13 }
 0x99a   :  { %v1131_v16 = vsub.f32 %v1129_v15, %v1130_v14 }
 0x99c   :  { %v1133_v17 = vadd.f32 1e-05, %v1131_v16 }
 0x99e   :  { %3040 = vrsqrt.f32 %v1133_v17 }
 0x9a8   :  { %v3041_v19 = vpop.eup %3040 }
 0x9a9   :  { %v1135_v21 = vmul.f32 %v3041_v19, %v1132_v18 }
 0x9ab   :  { %v1136_v23 = vmul.f32 %v1135_v21, %v67_v20 }
 0x9ad   :  { %v3365_v24 = vadd.f32 %v1136_v23, %v68_v22 }
 0x9af   :  { %2733 = vmatmul.mubr.msk.f32.vlgmr.msra.gmra.mrb[14].mxu1 %vm73_vm1, %v3365_v24 }
 0x9b0   :  { %2737 = vmatprep.mubr.msk.f32.mxu1 %vm3166_vm0, %v3167_v1 }
 0xa82   :  { %v1220_v26 = vpop.f32.mrb[14].mxu1 }
 0xa83   :  { %v3371_v27 = vadd.f32 %v1220_v26, %v1138_v25  ;;  %v2734_v28 = vpop.f32.mrb[15].mxu1 }
 0xa84   :  { %v1901_v28 = vld [vmem:[#allocation3 + $0x70] sm:$0xff] }
 0xa85   :  { %1225 = vrot.lane.b32.xlu1 %v3371_v27, %s3169_s0 }
 0xa89   :  { %1391 = vrot.lane.b32.xlu1 %v3371_v27, %s3170_s5 }
 0xa8d   :  { %1389 = vrot.lane.b32.xlu1 %v3371_v27, %s3171_s6 }
 0xaf7   :  { %v1226_v30 = vpop.permute.xlu1 %1225 }
 0xaf8   :  { %2736 = vmatpush3.xpose.msk.msra.mxu1 %vm150_vm2, %v1226_v30 }
 0xaf9   :  { %2740 = vmatprep.subr.mxu1 %v3167_v1 }
 0xafb   :  { %2738 = vmatmul.mubr.msk.f32.vlgmr.msra.gmra.mrb[16].mxu1 %vm150_vm2, %v3371_v27  ;;  %v1392_v39 = vpop.permute.xlu1 %1391 }
 0xafc   :  { %2742 = vmatprep.mubr.msk.f32.mxu1 %vm3166_vm0, %v3167_v1 }
 0xaff   :  { %v1390_v42 = vpop.permute.xlu1 %1389 }
 0xbce   :  { %v1297_v31 = vpop.f32.mrb[16].mxu1 }
 0xbcf   :  { %v2739_v32 = vpop.f32.mrb[17].mxu1  ;;  %v1301_v33 = vsel %vm150_vm2, %v1297_v31, -inf }
 0xbd0   :  { %1302 = vmax.xlane.f32.xlu0 %v1301_v33  ;;  %v1903_v32 = vld [vmem:[#allocation3 + $0x100] sm:$0xff] }
 0xbe6   :  { %1310 = vrot.lane.b32.xlu0 %v3371_v27, %s3168_s30 }
 0xbea   :  { %1476 = vrot.lane.b32.xlu0 %v3371_v27, %s3175_s10 }
 0xbee   :  { %1561 = vrot.lane.b32.xlu0 %v3371_v27, %s3172_s7 }
 0xbf2   :  { %1559 = vrot.lane.b32.xlu0 %v3371_v27, %s3173_s8 }
 0xbf6   :  { %1731 = vrot.lane.b32.xlu0 %v3371_v27, %s3161_s13  ;;  %s3180_s13 = smov [#allocation9]  }
 0xbf7   :  { %s2467_s15 = sshll.u32 %s3180_s13, 4  ;;  %s2468_s15 = int_to_ptr.vmem [resolvable:$true] %s2467_s15 }
 0xbf8   :  { %s3128_s16 = scalar_lea.vmem %s2468_s15, 128  ;;  %p3133_p11 = scmp.lt.s32.totalorder %s2468_s15, %s2468_s15 }
 0xbf9   :  { %p3129_p10 = scmp.ne.s32.totalorder %s2468_s15, %s3128_s16  ;;  %p3134_p12 = scmp.lt.s32.totalorder %s3128_s16, %s3128_s16 }
 0xbfa   :  { %1729 = vrot.lane.b32.xlu0 %v3371_v27, %s3174_s9 }
 0xbfb   :  { %p3135_p13 = por %p3134_p12, %p3133_p11 }
 0xbfd   :  { %p3136_p0 = pnand %p3135_p13, %p3129_p10 }
 0xc5d   :  { %v1303_v34 = vpop.xlane.xlu0 %1302 }
 0xc5e   :  { %v1304_v35 = vsub.f32 %v1297_v31, %v1303_v34  ;;  %v1902_v31 = vld [vmem:[#allocation3 + $0xb8] sm:$0xff] }
 0xc5f   :  { %v2913_v33 = vpack.c.bf16 %v1903_v32, %v1902_v31 }
 0xc60   :  { %v1305_v36 = vmul.f32 1.442695, %v1304_v35 }
 0xc61   :  { %v1311_v37 = vpop.permute.xlu0 %1310 }
 0xc62   :  { %3042 = vpow2.f32 %v1305_v36  ;;  %2741 = vmatpush3.msra.mxu1 %v1311_v37 }
 0xc63   :  { %2745 = vmatprep.subr.mxu1 %v3167_v1 }
 0xc65   :  { %v1477_v38 = vpop.permute.xlu0 %1476 }
 0xc69   :  { %v1562_v8 = vpop.permute.xlu0 %1561 }
 0xc6c   :  { %v3043_v40 = vpop.eup %3042 }
 0xc6d   :  { %2743 = vmatmul.mubr.msk.f32.vlgmr.msra.gmra.mrb[18].mxu1 %vm150_vm2, %v3043_v40  ;;  %v1560_v41 = vpop.permute.xlu0 %1559  ;;  %v1307_v4 = vsel %vm150_vm2, %v3043_v40, 0.0 }
 0xc6e   :  { %2746 = vmatpush3.xpose.msk.msra.mxu1 %vm150_vm2, %v1392_v39  ;;  %2747 = vmatprep.mubr.msk.f32.mxu1 %vm3166_vm0, %v3167_v1 }
 0xc6f   :  { %2750 = vmatprep.subr.mxu1 %v3167_v1 }
 0xc71   :  { %2748 = vmatmul.mubr.msk.f32.vlgmr.msra.gmra.mrb[20].mxu1 %vm150_vm2, %v1390_v42  ;;  %v1732_v29 = vpop.permute.xlu0 %1731 }
 0xc72   :  { %2751 = vmatpush3.msra.mxu1 %v1477_v38  ;;  %2766 = vmatpush3.xpose.msk.msra.mxu0 %vm150_vm2, %v1732_v29 }
 0xc73   :  { %2752 = vmatprep.mubr.msk.f32.mxu1 %vm3166_vm0, %v3167_v1  ;;  %2755 = vmatprep.subr.mxu1 %v3167_v1 }
 0xc74   :  { %2909 = vmatprep.subr.bf16.mxu0 %v3165_v0 }
 0xc75   :  { %v1730_v43 = vpop.permute.xlu0 %1729 }
 0xc76   :  { %2768 = vmatmul.mubr.msk.f32.vlgmr.msra.gmra.mrb[10].mxu0 %vm150_vm2, %v1730_v43  ;;  %v1139_v43 = vld [vmem:[#allocation8 + $0x11] ss:$0 sm:$0xff] }
 0xc77   :  { %2783 = vmatprep.mubr.msk.f32.mxu0 %vm3166_vm0, %v3167_v1 }
 0xd40   :  { %v1382_v44 = vpop.f32.mrb[18].mxu1 }
 0xd41   :  { %v2744_v47 = vpop.f32.mrb[19].mxu1 }
 0xd44   :  { %v1463_v49 = vpop.f32.mrb[20].mxu1 }
 0xd45   :  { %v2749_v50 = vpop.f32.mrb[21].mxu1  ;;  %v1467_v51 = vsel %vm150_vm2, %v1463_v49, -inf }
 0xd46   :  { %1468 = vmax.xlane.f32.xlu1 %v1467_v51 }
 0xd49   :  { %v1803_v52 = vpop.f32.mrb[10].mxu0 }
 0xd4a   :  { %v2769_v53 = vpop.f32.mrb[11].mxu0  ;;  %v1807_v54 = vsel %vm150_vm2, %v1803_v52, -inf }
 0xd4b   :  { %1808 = vmax.xlane.f32.xlu1 %v1807_v54  ;;  %v1996_v54 = vld [vmem:[#allocation3 + $0x38] sm:$0xff] }
 0xd5c   :  { %1646 = vrot.lane.b32.xlu1 %v3371_v27, %s3177_s12 }
 0xdd3   :  { %v1469_v55 = vpop.xlane.xlu1 %1468 }
 0xdd4   :  { %v1470_v56 = vsub.f32 %v1463_v49, %v1469_v55  ;;  %v1998_v55 = vld [vmem:[#allocation3 + $0x80] sm:$0xff] }
 0xdd6   :  { %v1471_v57 = vmul.f32 1.442695, %v1470_v56  ;;  %v2915_v56 = vpack.c.bf16 %v1998_v55, %v1996_v54 }
 0xdd8   :  { %3044 = vpow2.f32 %v1471_v57  ;;  %v1809_v58 = vpop.xlane.xlu1 %1808  ;;  %v1995_v57 = vld [vmem:[#allocation3 + $0x30] sm:$0xff] }
 0xdd9   :  { %v1810_v59 = vsub.f32 %v1803_v52, %v1809_v58  ;;  %v1997_v58 = vld [vmem:[#allocation3 + $0x78] sm:$0xff] }
 0xddb   :  { %v1811_v60 = vmul.f32 1.442695, %v1810_v59  ;;  %v2917_v59 = vpack.c.bf16 %v1997_v58, %v1995_v57  ;;  %v1144_v58 = vld [vmem:[#allocation8 + $0x15] ss:$0 sm:$0xff] }
 0xddc   :  { %v1647_v2 = vpop.permute.xlu1 %1646 }
 0xddd   :  { %3046 = vpow2.f32 %v1811_v60  ;;  %v2002_v60 = vld [vmem:[#allocation3 + $0x110] sm:$0xff] }
 0xde2   :  { %v3045_v61 = vpop.eup %3044 }
 0xde3   :  { %2753 = vmatmul.mubr.msk.f32.vlgmr.msra.gmra.mrb[22].mxu1 %vm150_vm2, %v3045_v61  ;;  %v1473_v62 = vsel %vm150_vm2, %v3045_v61, 0.0  ;;  %v1999_v61 = vld [vmem:[#allocation3 + $0xc0] sm:$0xff] }
 0xde4   :  { %2756 = vmatpush3.xpose.msk.msra.mxu1 %vm150_vm2, %v1562_v8  ;;  %1474 = vadd.xlane.f32.xlu1 %v1473_v62 }
 0xde5   :  { %2757 = vmatprep.mubr.msk.f32.mxu1 %vm3166_vm0, %v3167_v1  ;;  %2760 = vmatprep.subr.mxu1 %v3167_v1 }
 0xde7   :  { %v3047_v63 = vpop.eup %3046  ;;  %2758 = vmatmul.mubr.msk.f32.vlgmr.msra.gmra.mrb[24].mxu1 %vm150_vm2, %v1560_v41 }
 0xde8   :  { %2761 = vmatpush3.msra.mxu1 %v1647_v2  ;;  %v1813_v3 = vsel %vm150_vm2, %v3047_v63, 0.0  ;;  %2762 = vmatprep.mubr.msk.f32.mxu1 %vm3166_vm0, %v3167_v1 }
 0xde9   :  { %1814 = vadd.xlane.f32.xlu1 %v1813_v3  ;;  %2770 = vmatprep.subr.mxu1 %v3167_v1  ;;  %v2106_v3 = vld [vmem:[#allocation6 + $0x208] sm:$0xff] }
 0xded   :  { %1308 = vadd.xlane.f32.xlu1 %v1307_v4  ;;  %v2107_v4 = vld [vmem:[#allocation6 + $0x228] sm:$0xff] }
 0xe71   :  { %v1475_v5 = vpop.xlane.xlu1 %1474 }
 0xe76   :  { %v1815_v6 = vpop.xlane.xlu1 %1814 }
 0xe7a   :  { %v1309_v7 = vpop.xlane.xlu1 %1308 }
 0xe7b   :  { %3048 = vrcp.f32 %v1309_v7  ;;  %v2091_v7 = vld [vmem:[#allocation6 + $0x28] sm:$0xff] }
 0xe7c   :  { %3050 = vrcp.f32 %v1475_v5  ;;  %v2090_v5 = vld [vmem:[#allocation6 + $0x8] sm:$0xff] }
 0xe85   :  { %v3049_v9 = vpop.eup %3048 }
 0xe86   :  { %v1387_v10 = vmul.f32 %v3049_v9, %v1382_v44  ;;  %v3051_v11 = vpop.eup %3050  ;;  %v2108_v9 = vld [vmem:[#allocation6 + $0x248] sm:$0xff] }
 0xe88   :  { %1388 = vst.msk [vmem:[#allocation2] sm:$0xff] %vm150_vm2, %v1387_v10  ;;  %v2109_v10 = vld [vmem:[#allocation6 + $0x268] sm:$0xff] }
 0xeb6   :  { %v1548_v12 = vpop.f32.mrb[22].mxu1 }
 0xeb7   :  { %v1553_v13 = vmul.f32 %v3051_v11, %v1548_v12  ;;  %v2754_v14 = vpop.f32.mrb[23].mxu1  ;;  %v2925_v11 = vpack.c.bf16 %v2091_v7, %v2090_v5  ;;  %v2927_v12 = vpack.c.bf16 %v2109_v10, %v2108_v9 }
 0xeb8   :  { %v2093_v14 = vld [vmem:[#allocation6 + $0x68] sm:$0xff] }
 0xeb9   :  { %1555 = vrot.lane.b32.xlu1 %v1553_v13, %s3178_s2  ;;  %v2092_v13 = vld [vmem:[#allocation6 + $0x48] sm:$0xff] }
 0xeba   :  { %v1633_v15 = vpop.f32.mrb[24].mxu1 }
 0xebb   :  { %v2759_v16 = vpop.f32.mrb[25].mxu1  ;;  %v1637_v17 = vsel %vm150_vm2, %v1633_v15, -inf }
 0xebc   :  { %1638 = vmax.xlane.f32.xlu0 %v1637_v17  ;;  %v2111_v16 = vld [vmem:[#allocation6 + $0x2a8] sm:$0xff]  ;;  %v2929_v17 = vpack.c.bf16 %v2093_v14, %v2092_v13 }
 0xed2   :  { %1816 = vrot.lane.b32.xlu0 %v3371_v27, %s3176_s11  ;;  %v1900_v27 = vld [vmem:[#allocation3 + $0x28] sm:$0xff] }
 0xed3   :  { %v2910_v30 = vpack.c.bf16 %v1901_v28, %v1900_v27  ;;  %v2097_v27 = vld [vmem:[#allocation6 + $0xe8] sm:$0xff] }
 0xed4   :  { %v2114_v28 = vld [vmem:[#allocation6 + $0x308] sm:$0xff] }
 0xed5   :  { %2911 = vmatpush3.bf16.msra.mxu0 %v2910_v30  ;;  %v2115_v30 = vld [vmem:[#allocation6 + $0x328] sm:$0xff] }
 0xed6   :  { %2912 = vmatprep.subr.bf16.mxu0 %v3165_v0  ;;  %v2939_v32 = vpack.c.bf16 %v2115_v30, %v2114_v28 }
 0xed9   :  { %2914 = vmatpush3.bf16.msra.mxu0 %v2913_v33  ;;  %v2098_v33 = vld [vmem:[#allocation6 + $0x108] sm:$0xff] }
 0xf2b   :  { %v1556_v18 = vpop.permute.xlu1 %1555 }
 0xf2c   :  { %1558 = vst.msk [vmem:[#allocation2] sm:$0xff] %vm482_vm3, %v1556_v18 }
 0xf49   :  { %v1639_v19 = vpop.xlane.xlu0 %1638 }
 0xf4a   :  { %v1640_v20 = vsub.f32 %v1633_v15, %v1639_v19  ;;  %v2110_v15 = vld [vmem:[#allocation6 + $0x288] sm:$0xff] }
 0xf4b   :  { %v2931_v18 = vpack.c.bf16 %v2111_v16, %v2110_v15  ;;  %v2094_v19 = vld [vmem:[#allocation6 + $0x88] sm:$0xff] }
 0xf4c   :  { %v1641_v21 = vmul.f32 1.442695, %v1640_v20  ;;  %v2095_v20 = vld [vmem:[#allocation6 + $0xa8] sm:$0xff] }
 0xf4d   :  { %v1817_v23 = vpop.permute.xlu0 %1816 }
 0xf4e   :  { %3052 = vpow2.f32 %v1641_v21  ;;  %v2112_v21 = vld [vmem:[#allocation6 + $0x2c8] sm:$0xff] }
 0xf58   :  { %v3053_v22 = vpop.eup %3052 }
 0xf59   :  { %2763 = vmatmul.mubr.msk.f32.vlgmr.msra.gmra.mrb[26].mxu1 %vm150_vm2, %v3053_v22  ;;  %v1643_v25 = vsel %vm150_vm2, %v3053_v22, 0.0  ;;  %v2113_v22 = vld [vmem:[#allocation6 + $0x2e8] sm:$0xff] }
 0xf5a   :  { %2771 = vmatpush3.msra.mxu1 %v1817_v23  ;;  %1644 = vadd.xlane.f32.xlu0 %v1643_v25  ;;  %v2933_v23 = vpack.c.bf16 %v2095_v20, %v2094_v19  ;;  %v2935_v25 = vpack.c.bf16 %v2113_v22, %v2112_v21  ;;  %v2213_v22 = vld [vmem:[#allocation3 + $0x40] sm:$0xff] }
 0xf5b   :  { %2772 = vmatprep.mubr.msk.f32.mxu1 %vm3166_vm0, %v3167_v1  ;;  %2916 = vmatprep.subr.bf16.mxu1 %v2915_v56  ;;  %v1143_v56 = vld [vmem:[#allocation8 + $0x14] ss:$0 sm:$0xff] }
 0xf5d   :  { %2773 = vmatmul.mubr.msk.f32.vlgmr.msra.gmra.mrb[28].mxu1 %vm150_vm2, %v3047_v63  ;;  %v2001_v63 = vld [vmem:[#allocation3 + $0x108] sm:$0xff] }
 0xf5e   :  { %2081 = vmatprep.mubr.f32.mxu1 %v3167_v1  ;;  %2918 = vmatpush1.bf16.msra.mxu1 %v2917_v59  ;;  %v2921_v2 = vpack.c.bf16 %v2001_v63, %v1999_v61  ;;  %v2103_v61 = vld [vmem:[#allocation6 + $0x1a8] sm:$0xff] }
 0xf5f   :  { %v2120_v63 = vld [vmem:[#allocation6 + $0x3c8] sm:$0xff] }
 0xfe7   :  { %v1645_v26 = vpop.xlane.xlu0 %1644 }
 0xfe8   :  { %3054 = vrcp.f32 %v1645_v26  ;;  %v2096_v26 = vld [vmem:[#allocation6 + $0xc8] sm:$0xff] }
 0xfe9   :  { %3056 = vrcp.f32 %v1815_v6  ;;  %v2923_v6 = vpack.c.bf16 %v2107_v4, %v2106_v3  ;;  %v2937_v31 = vpack.c.bf16 %v2097_v27, %v2096_v26  ;;  %v2104_v4 = vld [vmem:[#allocation6 + $0x1c8] sm:$0xff]  ;;  %v2215_v26 = vld [vmem:[#allocation3 + $0xd0] sm:$0xff]  ;;  %v2216_v27 = vld [vmem:[#allocation3 + $0x118] sm:$0xff] }
 0xfea   :  { %v2959_v28 = vpack.c.bf16 %v2216_v27, %v2215_v26  ;;  %v2212_v26 = vld [vmem:[#allocation8 + $0x22] ss:$0 sm:$0xff] }
 0xfeb   :  { %2924 = vmatprep.subr.bf16.mxu0 %v2923_v6  ;;  %v1141_v6 = vld [vmem:[#allocation8 + $0x12] ss:$8 sm:$0x3] }
 0xfec   :  { %v2007_v7 = vrot.slane %v1141_v6, %v934_v46  ;;  %v2011_v9 = vrot.slane %v1141_v6, %v938_v48  ;;  %v2379_v6 = vld [vmem:[#allocation6 + $0x38] sm:$0xff] }
 0xff2   :  { %v3055_v34 = vpop.eup %3054 }
 0xff3   :  { %v3057_v38 = vpop.eup %3056 }
0x102c   :  { %v1718_v35 = vpop.f32.mrb[26].mxu1 }
0x102d   :  { %v1723_v36 = vmul.f32 %v3055_v34, %v1718_v35  ;;  %v2764_v37 = vpop.f32.mrb[27].mxu1  ;;  %v2099_v34 = vld [vmem:[#allocation6 + $0x128] sm:$0xff] }
0x102e   :  { %v2116_v35 = vld [vmem:[#allocation6 + $0x348] sm:$0xff]  ;;  %v2941_v37 = vpack.c.bf16 %v2099_v34, %v2098_v33 }
0x102f   :  { %1725 = vrot.lane.b32.xlu0 %v1723_v36, %s3164_s26  ;;  %v2117_v36 = vld [vmem:[#allocation6 + $0x368] sm:$0xff] }
0x1030   :  { %v1888_v8 = vpop.f32.mrb[28].mxu1 }
0x1031   :  { %v1893_v39 = vmul.f32 %v3057_v38, %v1888_v8  ;;  %v2774_v40 = vpop.f32.mrb[29].mxu1  ;;  %v2943_v38 = vpack.c.bf16 %v2117_v36, %v2116_v35  ;;  %v2100_v8 = vld [vmem:[#allocation6 + $0x148] sm:$0xff] }
0x1032   :  { %v2118_v40 = vld [vmem:[#allocation6 + $0x388] sm:$0xff] }
0x1033   :  { %1895 = vrot.lane.b32.xlu1 %v1893_v39, %s3179_s14  ;;  %v2101_v39 = vld [vmem:[#allocation6 + $0x168] sm:$0xff] }
0x10a1   :  { %v1726_v41 = vpop.permute.xlu0 %1725 }
0x10a2   :  { %1728 = vst.msk [vmem:[#allocation2] sm:$0xff] %vm653_vm4, %v1726_v41  ;;  %v2119_v41 = vld [vmem:[#allocation6 + $0x3a8] sm:$0xff] }
0x10a5   :  { %v1896_v42 = vpop.permute.xlu1 %1895 }
0x10a6   :  { %1898 = vst.msk [vmem:[#allocation2] sm:$0xff] %vm824_vm5, %v1896_v42  ;;  %v2945_v42 = vpack.c.bf16 %v2101_v39, %v2100_v8  ;;  %v1145_v8 = vld [vmem:[#allocation8 + $0x16] ss:$0 sm:$0xff] }
0x10ad   :  { %v1899_v29 = vld [vmem:[#allocation2] sm:$0xff] }
0x10ae   :  { %2784 = vmatmul.mubr.msk.f32.vlgmr.msra.gmra.mrb[12].mxu0 %vm73_vm1, %v1899_v29  ;;  %v2947_v29 = vpack.c.bf16 %v2119_v41, %v2118_v40  ;;  %v2291_v40 = vld [vmem:[#allocation6 + $0x10] sm:$0xff] }
0x10af   :  { %2926 = vmatpush3.bf16.msra.mxu0 %v2925_v11  ;;  %v2292_v41 = vld [vmem:[#allocation6 + $0x30] sm:$0xff] }
0x10b0   :  { %2928 = vmatprep.subr.bf16.mxu0 %v2927_v12 }
0x10b3   :  { %2930 = vmatpush3.bf16.msra.mxu0 %v2929_v17  ;;  %v1142_v17 = vld [vmem:[#allocation8 + $0x13] ss:$0 sm:$0xff] }
0x10b4   :  { %2932 = vmatprep.subr.bf16.mxu0 %v2931_v18 }
0x10b7   :  { %2934 = vmatpush3.bf16.msra.mxu0 %v2933_v23  ;;  %v2214_v23 = vld [vmem:[#allocation3 + $0x88] sm:$0xff] }
0x10b8   :  { %2936 = vmatprep.subr.bf16.mxu0 %v2935_v25  ;;  %v2956_v25 = vpack.c.bf16 %v2214_v23, %v2213_v22 }
0x10bb   :  { %2938 = vmatpush3.bf16.msra.mxu0 %v2937_v31 }
0x10bc   :  { %2940 = vmatprep.subr.bf16.mxu0 %v2939_v32 }
0x10bf   :  { %2942 = vmatpush3.bf16.msra.mxu0 %v2941_v37 }
0x10c0   :  { %2944 = vmatprep.subr.bf16.mxu0 %v2943_v38 }
0x10c3   :  { %2946 = vmatpush3.bf16.msra.mxu0 %v2945_v42  ;;  %v1146_v42 = vld [vmem:[#allocation8 + $0x17] ss:$0 sm:$0xff] }
0x10c4   :  { %2948 = vmatprep.subr.bf16.mxu0 %v2947_v29 }
0x1181   :  { %v1973_v44 = vpop.f32.mrb[12].mxu0 }
0x1182   :  { %v1974_v47 = vadd.f32 %v1973_v44, %v1139_v43  ;;  %v2785_v49 = vpop.f32.mrb[13].mxu0 }
0x1184   :  { %v3448_v50 = vadd.f32 %v1974_v47, %v3365_v24  ;;  %v2000_v24 = vld [vmem:[#allocation3 + $0xc8] sm:$0xff] }
0x1185   :  { %v2919_v62 = vpack.c.bf16 %v2002_v60, %v2000_v24  ;;  %v2102_v60 = vld [vmem:[#allocation6 + $0x188] sm:$0xff] }
0x1186   :  { %v1978_v51 = vsel %vm73_vm1, %v3448_v50, 0.0  ;;  %v1982_v52 = vmul.f32 %v3448_v50, %v3448_v50 }
0x1187   :  { %1979 = vadd.xlane.f32.xlu1 %v1978_v51  ;;  %2920 = vmatprep.subr.bf16.mxu1 %v2919_v62  ;;  %v2949_v62 = vpack.c.bf16 %v2103_v61, %v2102_v60  ;;  %v2302_v60 = vld [vmem:[#allocation6 + $0x170] sm:$0xff] }
0x1188   :  { %v1983_v53 = vsel %vm73_vm1, %v1982_v52, 0.0  ;;  %2922 = vmatpush1.bf16.msra.mxu1 %v2921_v2  ;;  %v2121_v2 = vld [vmem:[#allocation6 + $0x3e8] sm:$0xff] }
0x1189   :  { %1984 = vadd.xlane.f32.xlu0 %v1983_v53  ;;  %2955 = vmatprep.subr.bf16.mxu1 %v3165_v0  ;;  %v2951_v3 = vpack.c.bf16 %v2121_v2, %v2120_v63  ;;  %v2304_v63 = vld [vmem:[#allocation6 + $0x1b0] sm:$0xff] }
0x118a   :  { %2950 = vmatpush3.bf16.msra.mxu0 %v2949_v62  ;;  %v2303_v62 = vld [vmem:[#allocation6 + $0x190] sm:$0xff] }
0x118b   :  { %2952 = vmatprep.subr.bf16.mxu0 %v2951_v3  ;;  %v2980_v2 = vpack.c.bf16 %v2304_v63, %v2303_v62  ;;  %v2305_v3 = vld [vmem:[#allocation6 + $0x1d0] sm:$0xff] }
0x1214   :  { %v1980_v43 = vpop.xlane.xlu1 %1979 }
0x1215   :  { %v1981_v44 = vmul.f32 0.03125, %v1980_v43  ;;  %v2962_v43 = vpack.c.bf16 %v2292_v41, %v2291_v40 }
0x1216   :  { %v1985_v47 = vpop.xlane.xlu0 %1984 }
0x1217   :  { %v1987_v49 = vmul.f32 %v1981_v44, %v1981_v44  ;;  %v1986_v51 = vmul.f32 0.03125, %v1985_v47  ;;  %v1989_v54 = vsub.f32 %v3448_v50, %v1981_v44  ;;  %v2105_v50 = vld [vmem:[#allocation6 + $0x1e8] sm:$0xff]  ;;  %v2293_v47 = vld [vmem:[#allocation6 + $0x50] sm:$0xff] }
0x1218   :  { %v2953_v5 = vpack.c.bf16 %v2105_v50, %v2104_v4  ;;  %v2306_v4 = vld [vmem:[#allocation6 + $0x1f0] sm:$0xff] }
0x1219   :  { %v1988_v52 = vsub.f32 %v1986_v51, %v1987_v49  ;;  %v2294_v49 = vld [vmem:[#allocation6 + $0x70] sm:$0xff]  ;;  %v2983_v50 = vpack.c.bf16 %v2306_v4, %v2305_v3 }
0x121a   :  { %2954 = vmatpush3.bf16.msra.mxu0 %v2953_v5  ;;  %v2965_v51 = vpack.c.bf16 %v2294_v49, %v2293_v47  ;;  %v2378_v5 = vld [vmem:[#allocation6 + $0x18] sm:$0xff] }
0x121b   :  { %v1990_v53 = vadd.f32 1e-05, %v1988_v52  ;;  %2985 = vmatprep.subr.bf16.mxu0 %v3165_v0  ;;  %v2295_v52 = vld [vmem:[#allocation6 + $0x90] sm:$0xff] }
0x121d   :  { %3058 = vrsqrt.f32 %v1990_v53  ;;  %v2296_v53 = vld [vmem:[#allocation6 + $0xb0] sm:$0xff] }
0x1227   :  { %v3059_v55 = vpop.eup %3058 }
0x1228   :  { %v1992_v57 = vmul.f32 %v3059_v55, %v1989_v54  ;;  %v2968_v54 = vpack.c.bf16 %v2296_v53, %v2295_v52  ;;  %v2297_v55 = vld [vmem:[#allocation6 + $0xd0] sm:$0xff] }
0x122a   :  { %v1993_v59 = vmul.f32 %v1992_v57, %v1143_v56  ;;  %v2298_v56 = vld [vmem:[#allocation6 + $0xf0] sm:$0xff] }
0x122b   :  { %v2971_v57 = vpack.c.bf16 %v2298_v56, %v2297_v55 }
0x122c   :  { %v1994_v24 = vadd.f32 %v1993_v59, %v1144_v58  ;;  %v2299_v58 = vld [vmem:[#allocation6 + $0x110] sm:$0xff] }
0x122d   :  { %v2300_v59 = vld [vmem:[#allocation6 + $0x130] sm:$0xff] }
0x122e   :  { %2506 = vmatmul.mubr.msk.f32.vlgmr.msra.gmra.mrb[30].mxu1 %vm73_vm1, %v1994_v24 }
0x122f   :  { %2794 = vmatprep.mubr.msk.f32.mxu1 %vm3166_vm0, %v3167_v1  ;;  %2957 = vmatpush3.bf16.msra.mxu1 %v2956_v25 }
0x1230   :  { %2958 = vmatprep.subr.bf16.mxu1 %v3165_v0 }
0x1233   :  { %2960 = vmatpush3.bf16.msra.mxu1 %v2959_v28 }
0x1234   :  { %2961 = vmatprep.subr.bf16.mxu1 %v3165_v0 }
0x1301   :  { %v2083_v10 = vpop.f32.mrb[30].mxu1 }
0x1302   :  { %v2084_v11 = vadd.f32 %v2083_v10, %v2007_v7  ;;  %v2085_v12 = vpop.f32.mrb[31].mxu1  ;;  %v2380_v7 = vld [vmem:[#allocation6 + $0x58] sm:$0xff] }
0x1303   :  { %v2086_v13 = vadd.f32 %v2085_v12, %v2011_v9  ;;  %v2986_v9 = vpack.c.bf16 %v2379_v6, %v2378_v5  ;;  %v2381_v10 = vld [vmem:[#allocation6 + $0x78] sm:$0xff] }
0x1304   :  { %v2088_v15 = vmax.f32 %v2084_v11, 0.0  ;;  %v2989_v11 = vpack.c.bf16 %v2381_v10, %v2380_v7  ;;  %v2382_v12 = vld [vmem:[#allocation6 + $0x98] sm:$0xff] }
0x1305   :  { %v2089_v14 = vmax.f32 %v2086_v13, 0.0  ;;  %v2383_v13 = vld [vmem:[#allocation6 + $0xb8] sm:$0xff] }
0x1307   :  { %2186 = vmatprep.mubr.f32.mxu0 %v2089_v14  ;;  %v2992_v14 = vpack.c.bf16 %v2383_v13, %v2382_v12 }
0x1308   :  { %2187 = vmatmul.mubr.f32.vlgmr.msra.gmra.mrb[14].mxu0 %v2088_v15  ;;  %v2210_v15 = vld [vmem:[#allocation8 + $0x20] ss:$0 sm:$0xff] }
0x1309   :  { %2848 = vmatprep.mubr.msk.f32.mxu0 %vm3166_vm0, %v3167_v1  ;;  %2987 = vmatpush3.bf16.msra.mxu0 %v2986_v9 }
0x130a   :  { %2988 = vmatprep.subr.bf16.mxu0 %v3165_v0 }
0x130d   :  { %2990 = vmatpush3.bf16.msra.mxu0 %v2989_v11 }
0x130e   :  { %2991 = vmatprep.subr.bf16.mxu0 %v3165_v0 }
0x1311   :  { %2993 = vmatpush3.bf16.msra.mxu0 %v2992_v14 }
0x1312   :  { %2994 = vmatprep.subr.bf16.mxu0 %v3165_v0 }
0x13db   :  { %v2628_v16 = vpop.f32.mrb[14].mxu0 }
0x13dc   :  { %v2629_v18 = vpop.f32.mrb[15].mxu0 }
0x13dd   :  { %v2630_v19 = vadd.f32 %v2629_v18, %v2628_v16 }
0x13df   :  { %v2189_v20 = vadd.f32 %v2630_v19, %v1142_v17 }
0x13e1   :  { %v2192_v46 = vadd.f32 %v2189_v20, %v1994_v24  ;;  %v2974_v24 = vpack.c.bf16 %v2300_v59, %v2299_v58  ;;  %v2384_v20 = vld [vmem:[#allocation6 + $0xd8] sm:$0xff] }
0x13e3   :  { %v2193_v45 = vsel %vm73_vm1, %v2192_v46, 0.0  ;;  %v2197_v48 = vmul.f32 %v2192_v46, %v2192_v46 }
0x13e4   :  { %2194 = vadd.xlane.f32.xlu1 %v2193_v45 }
0x13e5   :  { %v2198_v21 = vsel %vm73_vm1, %v2197_v48, 0.0  ;;  %v2211_v48 = vld [vmem:[#allocation8 + $0x21] ss:$0 sm:$0xff] }
0x13e6   :  { %2199 = vadd.xlane.f32.xlu0 %v2198_v21 }
0x1471   :  { %v2195_v30 = vpop.xlane.xlu1 %2194 }
0x1472   :  { %v2196_v31 = vmul.f32 0.03125, %v2195_v30 }
0x1473   :  { %v2200_v32 = vpop.xlane.xlu0 %2199 }
0x1474   :  { %v2202_v33 = vmul.f32 %v2196_v31, %v2196_v31  ;;  %v2201_v34 = vmul.f32 0.03125, %v2200_v32  ;;  %v2204_v37 = vsub.f32 %v2192_v46, %v2196_v31  ;;  %v2385_v46 = vld [vmem:[#allocation6 + $0xf8] sm:$0xff] }
0x1475   :  { %v2995_v45 = vpack.c.bf16 %v2385_v46, %v2384_v20 }
0x1476   :  { %v2203_v35 = vsub.f32 %v2201_v34, %v2202_v33 }
0x1477   :  { %2996 = vmatpush3.bf16.msra.mxu0 %v2995_v45 }
0x1478   :  { %v2205_v36 = vadd.f32 1e-05, %v2203_v35 }
0x147a   :  { %3060 = vrsqrt.f32 %v2205_v36 }
0x1484   :  { %v3061_v38 = vpop.eup %3060 }
0x1485   :  { %v2207_v39 = vmul.f32 %v3061_v38, %v2204_v37 }
0x1487   :  { %v2208_v29 = vmul.f32 %v2207_v39, %v1145_v8 }
0x1489   :  { %v2209_v44 = vadd.f32 %v2208_v29, %v1146_v42 }
0x148b   :  { %2795 = vmatmul.mubr.msk.f32.vlgmr.msra.gmra.mrb[32].mxu1 %vm73_vm1, %v2209_v44 }
0x148c   :  { %2963 = vmatpush3.bf16.msra.mxu1 %v2962_v43  ;;  %2829 = vmatprep.mubr.msk.f32.mxu1 %vm3166_vm0, %v3167_v1  ;;  %v2301_v1 = vld [vmem:[#allocation6 + $0x150] sm:$0xff] }
0x148d   :  { %2964 = vmatprep.subr.bf16.mxu1 %v3165_v0  ;;  %v2977_v61 = vpack.c.bf16 %v2302_v60, %v2301_v1 }
0x1490   :  { %2966 = vmatpush3.bf16.msra.mxu1 %v2965_v51 }
0x1491   :  { %2967 = vmatprep.subr.bf16.mxu1 %v3165_v0 }
0x1494   :  { %2969 = vmatpush3.bf16.msra.mxu1 %v2968_v54 }
0x1495   :  { %2970 = vmatprep.subr.bf16.mxu1 %v3165_v0 }
0x1498   :  { %2972 = vmatpush3.bf16.msra.mxu1 %v2971_v57 }
0x1499   :  { %2973 = vmatprep.subr.bf16.mxu1 %v3165_v0 }
0x149c   :  { %2975 = vmatpush3.bf16.msra.mxu1 %v2974_v24 }
0x149d   :  { %2976 = vmatprep.subr.bf16.mxu1 %v3165_v0 }
0x14a0   :  { %2978 = vmatpush3.bf16.msra.mxu1 %v2977_v61 }
0x14a1   :  { %2979 = vmatprep.subr.bf16.mxu1 %v3165_v0 }
0x14a4   :  { %2981 = vmatpush3.bf16.msra.mxu1 %v2980_v2 }
0x14a5   :  { %2982 = vmatprep.subr.bf16.mxu1 %v3165_v0 }
0x14a8   :  { %2984 = vmatpush3.bf16.msra.mxu1 %v2983_v50 }
0x155e   :  { %v2286_v16 = vpop.f32.mrb[32].mxu1 }
0x155f   :  { %v2287_v17 = vadd.f32 %v2286_v16, %v2210_v15  ;;  %v2796_v18 = vpop.f32.mrb[33].mxu1 }
0x1561   :  { %v2290_v19 = vmax.f32 %v2287_v17, 0.0 }
0x1563   :  { %2830 = vmatmul.mubr.f32.vlgmr.msra.gmra.mrb[34].mxu1 %v2290_v19 }
0x1636   :  { %v2373_v21 = vpop.f32.mrb[34].mxu1 }
0x1637   :  { %v2374_v22 = vadd.f32 %v2373_v21, %v2211_v48  ;;  %v2831_v23 = vpop.f32.mrb[35].mxu1 }
0x1639   :  { %v2377_v25 = vmax.f32 %v2374_v22, 0.0 }
0x163b   :  { %2849 = vmatmul.mubr.msk.f32.vlgmr.msra.gmra.mrb[16].mxu0 %vm2386_vm6, %v2377_v25 }
0x170e   :  { %v2456_v0 = vpop.f32.mrb[16].mxu0 }
0x170f   :  { %v2457_v27 = vadd.f32 %v2456_v0, %v2212_v26  ;;  %v2850_v28 = vpop.f32.mrb[17].mxu0 }
0x1711   :  { %2460 = vst [vmem:[#allocation9] sm:$0xff] %v2457_v27 }
0x1712   :  { %3139 = shalt.err (!%p3136_p0)
}
0x1713   :  { %s3140_s19 = scalar_lea.hbm %s3500_s4, 128 }
0x1714   :  { %p3141_p1 = scmp.ne.s32.totalorder %s3500_s4, %s3140_s19  ;;  %p3144_p2 = scmp.lt.u32.totalorder %s3140_s19, %s3500_s4 }
0x1716   :  { %p3146_p3 = pnand %p3144_p2, %p3141_p1 }
0x1718   :  { %3149 = shalt.err (!%p3146_p3)
}
0x1719   :  { %2470 = dma.vmem_to_hbm [thread:$0]  %s2468_s15, 128, %s3500_s4, [#allocation5]  }
0x171a   :  { %3154 = dma.done.wait [#allocation5], 128  }
0x171b   :  { %3155 = vsyncadd [#allocation5], 4294967168 }
0x171c   :  { %2474 = vsyncpa [#allocation4], 1 }
0x171d   :  { %2475 = vsyncpa [#allocation7], 1 }
0x171e   :  { %2476 = vsyncpa [#allocation5], 1 }

</bundles_post_ra>
